<compile_context>
chip_gen: v7x
topology: tpu7x:2x2x1
jax: 0.10.0
libtpu: 0.0.40
codegen_flags: <defaults>
</compile_context>

<pallas_src>
import functools

import jax
import jax.numpy as jnp
from jax.experimental import pallas as pl
from jax.experimental.pallas import tpu as pltpu


# ----------------------------- kernel helpers ------------------------------ #

def _layernorm(x, gamma, beta, eps=1e-6):
    mu = jnp.mean(x, axis=-1, keepdims=True)
    var = jnp.mean((x - mu) ** 2, axis=-1, keepdims=True)
    return (x - mu) * jax.lax.rsqrt(var + eps) * gamma + beta


# -------------------------------- kernel ----------------------------------- #

def decoder_layer_kernel(num_heads, return_weights, *refs):
    f32 = jnp.float32
    bf16 = jnp.bfloat16

    if return_weights:
        in_refs, (out_ref, aw1_ref, aw2_ref) = refs[:-3], refs[-3:]
    else:
        in_refs, out_ref = refs[:-1], refs[-1]
        aw1_ref = aw2_ref = None

    (x_ref, enc_ref, lam_ref, pm_ref,
     wqkv1_ref, bqkv1_ref, wo1_ref, bo1_ref,
     wq2_ref, bq2_ref, wkv2_ref, bkv2_ref, wo2_ref, bo2_ref,
     w1_ref, b1_ref, w2_ref, b2_ref,
     g1_ref, be1_ref, g2_ref, be2_ref, g3_ref, be3_ref) = in_refs

    x = x_ref[0]                 # (Sq, D)  f32
    enc = enc_ref[0]             # (Sk, D)  f32
    Sq, D = x.shape
    H = num_heads
    depth = D // H
    scale = 1.0 / float(depth) ** 0.5

    # Additive masks (same -1e9 convention as the PyTorch reference).
    neg_la = lam_ref[0] * (-1e9)     # (Sq, Sq)   — broadcasts over heads
    neg_pm = pm_ref[0] * (-1e9)      # (1,  Sk)   — broadcasts over heads and Sq

    def heads_proj(inp_bf, w_ref_, b_ref_):
        # inp_bf: (S, D) bf16; w: (H, D, E) bf16; b: (H, 1, E) f32  ->  (H, S, E) f32.
        # Leading-batch einsum: the projection output is already head-major, so no
        # head split / transpose / stack is ever needed.
        S = inp_bf.shape[0]
        inp_h = jnp.broadcast_to(inp_bf[None], (H, S, D))
        return (jnp.einsum('hsd,hde->hse', inp_h, w_ref_[...],
                           preferred_element_type=f32) + b_ref_[...])

    def attention(q, k, v, neg_mask, wo_ref_, bo_ref_):
        # q: (H, Sq, depth) bf16; k/v: (H, S, depth) bf16.  One batched QK^T, one
        # softmax, one batched PV for ALL heads.
        logits = jnp.einsum('hqd,hkd->hqk', q, k,
                            preferred_element_type=f32) * scale
        logits = logits + neg_mask
        logits = logits - jnp.max(logits, axis=-1, keepdims=True)
        e = jnp.exp(logits)
        # Exact normalization (weights are returned to the caller).
        weights = e / jnp.sum(e, axis=-1, keepdims=True)        # (H, Sq, S) f32
        ctx = jnp.einsum('hqk,hkd->hqd', weights.astype(bf16), v,
                         preferred_element_type=f32)            # (H, Sq, depth)
        # Per-head output projection + head-sum == concat(ctx_h) @ W_o, with no
        # per-head lane concat/relayout.  Unrolled head-sum lowers to plain adds.
        proj = jnp.einsum('hqd,hde->hqe', ctx.astype(bf16), wo_ref_[...],
                          preferred_element_type=f32)           # (H, Sq, D)
        out = proj[0]
        for h in range(1, H):
            out = out + proj[h]
        return out + bo_ref_[...], weights

    x_bf = x.astype(bf16)
    enc_bf = enc.astype(bf16)

    # ---- block 1: masked self-attention + residual + LayerNorm ----
    qkv1 = heads_proj(x_bf, wqkv1_ref, bqkv1_ref)               # (H, Sq, 3*depth)
    q1 = qkv1[..., :depth].astype(bf16)
    k1 = qkv1[..., depth:2 * depth].astype(bf16)
    v1 = qkv1[..., 2 * depth:].astype(bf16)
    attn1, aw1 = attention(q1, k1, v1, neg_la, wo1_ref, bo1_ref)
    # dropout1: identity (eval mode)
    out1 = _layernorm(x + attn1, g1_ref[...], be1_ref[...])

    # ---- block 2: cross-attention over encoder output + residual + LayerNorm ----
    q2 = heads_proj(out1.astype(bf16), wq2_ref, bq2_ref).astype(bf16)  # (H, Sq, depth)
    kv2 = heads_proj(enc_bf, wkv2_ref, bkv2_ref)                       # (H, Sk, 2*depth)
    k2 = kv2[..., :depth].astype(bf16)
    v2 = kv2[..., depth:].astype(bf16)
    attn2, aw2 = attention(q2, k2, v2, neg_pm, wo2_ref, bo2_ref)
    # dropout2: identity (eval mode)
    out2 = _layernorm(out1 + attn2, g2_ref[...], be2_ref[...])

    # ---- block 3: position-wise FFN + residual + LayerNorm ----
    hdn = jnp.dot(out2.astype(bf16), w1_ref[...],
                  preferred_element_type=f32) + b1_ref[...]
    hdn = jnp.maximum(hdn, 0.0)                                  # ReLU (f32)
    ffn = jnp.dot(hdn.astype(bf16), w2_ref[...],
                  preferred_element_type=f32) + b2_ref[...]
    # dropout3: identity (eval mode)
    out3 = _layernorm(out2 + ffn, g3_ref[...], be3_ref[...])

    out_ref[0] = out3
    if aw1_ref is not None:
        aw1_ref[0] = aw1
        aw2_ref[0] = aw2


# --------------------------- parameter pre-fusion --------------------------- #

def fuse_decoder_params(params, num_heads):
    """Reshape/fuse weights into head-major slabs and cast MXU operands to bf16.

    Call ONCE at parameter-init time and cache the result (this work must not be
    on the per-forward path)."""
    (wq1, bq1, wk1, bk1, wv1, bv1, wo1, bo1,
     wq2, bq2, wk2, bk2, wv2, bv2, wo2, bo2,
     w1, b1, w2, b2, g1, be1, g2, be2, g3, be3) = params

    D = wq1.shape[0]
    H = num_heads
    depth = D // H
    bf16 = jnp.bfloat16

    def out_heads(w):    # (D, D) -> (H, D, depth): per-head output columns
        return jnp.transpose(w.reshape(D, H, depth), (1, 0, 2))

    def bias_heads(b):   # (1, D) -> (H, 1, depth)
        return jnp.transpose(b.reshape(1, H, depth), (1, 0, 2))

    wqkv1 = jnp.concatenate([out_heads(wq1), out_heads(wk1), out_heads(wv1)],
                            axis=-1).astype(bf16)                  # (H, D, 3*depth)
    bqkv1 = jnp.concatenate([bias_heads(bq1), bias_heads(bk1), bias_heads(bv1)],
                            axis=-1)                               # (H, 1, 3*depth) f32
    wo1_h = wo1.reshape(H, depth, D).astype(bf16)                  # (H, depth, D)

    wq2_h = out_heads(wq2).astype(bf16)                            # (H, D, depth)
    bq2_h = bias_heads(bq2)                                        # (H, 1, depth)
    wkv2 = jnp.concatenate([out_heads(wk2), out_heads(wv2)],
                           axis=-1).astype(bf16)                   # (H, D, 2*depth)
    bkv2 = jnp.concatenate([bias_heads(bk2), bias_heads(bv2)], axis=-1)
    wo2_h = wo2.reshape(H, depth, D).astype(bf16)

    return (wqkv1, bqkv1, wo1_h, bo1,
            wq2_h, bq2_h, wkv2, bkv2, wo2_h, bo2,
            w1.astype(bf16), b1, w2.astype(bf16), b2,
            g1, be1, g2, be2, g3, be3)


# ------------------------------- wrapper ------------------------------------ #

def decoder_layer(x, enc_output, look_ahead_mask, padding_mask, fused_params,
                  num_heads, *, return_attention_weights=True):
    (wqkv1, bqkv1, wo1_h, bo1,
     wq2_h, bq2_h, wkv2, bkv2, wo2_h, bo2,
     w1, b1, w2, b2, g1, be1, g2, be2, g3, be3) = fused_params

    B, Sq, D = x.shape
    Sk = enc_output.shape[1]
    H = num_heads

    # Standard decoder mask shapes: look-ahead (B,1,Sq,Sq), padding (B,1,1,Sk),
    # broadcast over heads.  The padding mask is kept compact as (B,1,Sk) and is
    # broadcast inside the kernel (no dense (B,Sq,Sk) slab is DMA'd).
    la = jnp.broadcast_to(look_ahead_mask, (B, 1, Sq, Sq))[:, 0].astype(jnp.float32)
    pm = jnp.broadcast_to(padding_mask, (B, 1, 1, Sk))[:, 0].astype(jnp.float32)

    tensor_inputs = [x, enc_output, la, pm]
    weight_inputs = [wqkv1, bqkv1, wo1_h, bo1,
                     wq2_h, bq2_h, wkv2, bkv2, wo2_h, bo2,
                     w1, b1, w2, b2, g1, be1, g2, be2, g3, be3]

    def batched_spec(a):
        tail = a.shape[1:]
        n = len(tail)
        return pl.BlockSpec((1,) + tail, lambda b, _n=n: (b,) + (0,) * _n)

    def resident_spec(a):
        # Full block + constant index_map: weights stay VMEM-resident across steps.
        # TODO(synk): pipeline_mode=pl.Buffered(1) would single-buffer these and halve
        # their VMEM footprint at production D (matters most on v7x's 64 MiB).
        z = (0,) * a.ndim
        return pl.BlockSpec(a.shape, lambda b, _z=z: _z)

    in_specs = ([batched_spec(a) for a in tensor_inputs]
                + [resident_spec(a) for a in weight_inputs])

    if return_attention_weights:
        out_shape = (jax.ShapeDtypeStruct((B, Sq, D), jnp.float32),
                     jax.ShapeDtypeStruct((B, H, Sq, Sq), jnp.float32),
                     jax.ShapeDtypeStruct((B, H, Sq, Sk), jnp.float32))
        out_specs = (pl.BlockSpec((1, Sq, D), lambda b: (b, 0, 0)),
                     pl.BlockSpec((1, H, Sq, Sq), lambda b: (b, 0, 0, 0)),
                     pl.BlockSpec((1, H, Sq, Sk), lambda b: (b, 0, 0, 0)))
    else:
        out_shape = jax.ShapeDtypeStruct((B, Sq, D), jnp.float32)
        out_specs = pl.BlockSpec((1, Sq, D), lambda b: (b, 0, 0))

    return pl.pallas_call(
        functools.partial(decoder_layer_kernel, H, return_attention_weights),
        grid=(B,),
        out_shape=out_shape,
        in_specs=in_specs,
        out_specs=out_specs,
        compiler_params=pltpu.CompilerParams(
            # B=2 -> exactly 2 grid steps; shards across both v7x TensorCores.
            dimension_semantics=("parallel",),
            # <= 48 MiB: leaves headroom on v7x (64 MiB physical VMEM per core).
            vmem_limit_bytes=48 * 1024 * 1024,
        ),
    )(*tensor_inputs, *weight_inputs)


# -------------------------- pure-JAX reference ------------------------------ #

def _ref_decoder_layer(x, enc, la_mask, pad_mask, p, H):
    (wq1, bq1, wk1, bk1, wv1, bv1, wo1, bo1,
     wq2, bq2, wk2, bk2, wv2, bv2, wo2, bo2,
     w1, b1, w2, b2, g1, be1, g2, be2, g3, be3) = p

    def ln(x, g, b):
        mu = jnp.mean(x, axis=-1, keepdims=True)
        var = jnp.mean((x - mu) ** 2, axis=-1, keepdims=True)
        return (x - mu) / jnp.sqrt(var + 1e-6) * g + b

    def mha(xq, xkv, mask, wq, bq, wk, bk, wv, bv, wo, bo):
        B, Sq, D = xq.shape
        depth = D // H
        q, k, v = xq @ wq + bq, xkv @ wk + bk, xkv @ wv + bv
        split = lambda t: t.reshape(B, -1, H, depth).transpose(0, 2, 1, 3)
        q, k, v = split(q), split(k), split(v)
        logits = (q @ jnp.swapaxes(k, -1, -2)) / jnp.sqrt(jnp.float32(depth))
        logits = logits + mask * (-1e9)
        w = jax.nn.softmax(logits, axis=-1)
        o = (w @ v).transpose(0, 2, 1, 3).reshape(B, -1, D)
        return o @ wo + bo, w

    a1, w1_ = mha(x, x, la_mask, wq1, bq1, wk1, bk1, wv1, bv1, wo1, bo1)
    o1 = ln(x + a1, g1, be1)
    a2, w2_ = mha(o1, enc, pad_mask, wq2, bq2, wk2, bk2, wv2, bv2, wo2, bo2)
    o2 = ln(o1 + a2, g2, be2)
    ff = jnp.maximum(o2 @ w1 + b1, 0.0) @ w2 + b2
    o3 = ln(o2 + ff, g3, be3)
    return o3, w1_, w2_


# --------------------------------- main ------------------------------------- #

if __name__ == "__main__":
    B, S, S_ENC = 2, 8, 8
    D_MODEL, NUM_HEADS, DFF = 32, 4, 64

    key = jax.random.PRNGKey(0)
    keys = iter(jax.random.split(key, 64))

    def w(shape, scale=0.05):
        return (scale * jax.random.normal(next(keys), shape)).astype(jnp.float32)

    def mha_params():
        out = []
        for _ in range(4):  # wq, wk, wv, wo  (stored as (in, out) matrices)
            out.append(w((D_MODEL, D_MODEL)))
            out.append(w((1, D_MODEL), 0.02))
        return out

    params = (
        mha_params()                                  # mha1
        + mha_params()                                # mha2
        + [w((D_MODEL, DFF)), w((1, DFF), 0.02),      # ffn linear 1
           w((DFF, D_MODEL)), w((1, D_MODEL), 0.02)]  # ffn linear 2
        + [jnp.ones((1, D_MODEL), jnp.float32), w((1, D_MODEL), 0.02),  # ln1
           jnp.ones((1, D_MODEL), jnp.float32), w((1, D_MODEL), 0.02),  # ln2
           jnp.ones((1, D_MODEL), jnp.float32), w((1, D_MODEL), 0.02)]  # ln3
    )

    x = jax.random.normal(next(keys), (B, S, D_MODEL)).astype(jnp.float32)
    enc_output = jax.random.normal(next(keys), (B, S_ENC, D_MODEL)).astype(jnp.float32)

    # look-ahead (causal) mask: 1 above the diagonal
    look_ahead_mask = jnp.triu(jnp.ones((S, S), jnp.float32), k=1)
    look_ahead_mask = jnp.broadcast_to(look_ahead_mask, (B, 1, S, S))
    # padding mask: mask out the last two encoder positions
    pad = jnp.array([0, 0, 0, 0, 0, 0, 1, 1], jnp.float32)
    padding_mask = jnp.broadcast_to(pad.reshape(1, 1, 1, S_ENC), (B, 1, 1, S_ENC))

    # Pre-fuse weights ONCE (not on the per-call path).
    fused = fuse_decoder_params(params, NUM_HEADS)

    out3, aw1, aw2 = decoder_layer(x, enc_output, look_ahead_mask, padding_mask,
                                   fused, NUM_HEADS)
    jax.block_until_ready((out3, aw1, aw2))

    # Check against the plain-JAX f32 reference.  Tolerance is slightly loose because
    # MXU operands (incl. softmax probabilities for the PV matmul) are bf16 with f32
    # accumulation; softmax normalization itself is exact.
    r3, rw1, rw2 = _ref_decoder_layer(x, enc_output, look_ahead_mask,
                                      padding_mask, params, NUM_HEADS)
    assert jnp.allclose(out3, r3, atol=2e-2, rtol=2e-2), \
        float(jnp.max(jnp.abs(out3 - r3)))
    assert jnp.allclose(aw1, rw1, atol=1e-2, rtol=1e-2)
    assert jnp.allclose(aw2, rw2, atol=1e-2, rtol=1e-2)

    print("KERNEL_OK")
</pallas_src>

<mosaic_0001>
module attributes {stable_mosaic.version = 11 : i64} {
  func.func @decoder_layer_kernel(%arg0: i32, %arg1: memref<1x8x32xf32, #tpu.memory_space<vmem>>, %arg2: memref<1x8x32xf32, #tpu.memory_space<vmem>>, %arg3: memref<1x8x8xf32, #tpu.memory_space<vmem>>, %arg4: memref<1x1x8xf32, #tpu.memory_space<vmem>>, %arg5: memref<4x32x24xbf16, #tpu.memory_space<vmem>>, %arg6: memref<4x1x24xf32, #tpu.memory_space<vmem>>, %arg7: memref<4x8x32xbf16, #tpu.memory_space<vmem>>, %arg8: memref<1x32xf32, #tpu.memory_space<vmem>>, %arg9: memref<4x32x8xbf16, #tpu.memory_space<vmem>>, %arg10: memref<4x1x8xf32, #tpu.memory_space<vmem>>, %arg11: memref<4x32x16xbf16, #tpu.memory_space<vmem>>, %arg12: memref<4x1x16xf32, #tpu.memory_space<vmem>>, %arg13: memref<4x8x32xbf16, #tpu.memory_space<vmem>>, %arg14: memref<1x32xf32, #tpu.memory_space<vmem>>, %arg15: memref<32x64xbf16, #tpu.memory_space<vmem>>, %arg16: memref<1x64xf32, #tpu.memory_space<vmem>>, %arg17: memref<64x32xbf16, #tpu.memory_space<vmem>>, %arg18: memref<1x32xf32, #tpu.memory_space<vmem>>, %arg19: memref<1x32xf32, #tpu.memory_space<vmem>>, %arg20: memref<1x32xf32, #tpu.memory_space<vmem>>, %arg21: memref<1x32xf32, #tpu.memory_space<vmem>>, %arg22: memref<1x32xf32, #tpu.memory_space<vmem>>, %arg23: memref<1x32xf32, #tpu.memory_space<vmem>>, %arg24: memref<1x32xf32, #tpu.memory_space<vmem>>, %arg25: memref<1x8x32xf32, #tpu.memory_space<vmem>>, %arg26: memref<1x4x8x8xf32, #tpu.memory_space<vmem>>, %arg27: memref<1x4x8x8xf32, #tpu.memory_space<vmem>>) attributes {dimension_semantics = [#tpu.dimension_semantics<parallel>], iteration_bounds = array<i64: 2>, scalar_prefetch = 0 : i64, scratch_operands = 0 : i64, tpu.core_type = #tpu.core_type<tc>, window_params = [{transform_indices = @transform_0, window_bounds = array<i64: 1, 8, 32>}, {transform_indices = @transform_1, window_bounds = array<i64: 1, 8, 32>}, {transform_indices = @transform_2, window_bounds = array<i64: 1, 8, 8>}, {transform_indices = @transform_3, window_bounds = array<i64: 1, 1, 8>}, {pipeline_mode = #tpu.pipeline_mode<synchronous>, transform_indices = @transform_4, window_bounds = array<i64: 4, 32, 24>}, {pipeline_mode = #tpu.pipeline_mode<synchronous>, transform_indices = @transform_5, window_bounds = array<i64: 4, 1, 24>}, {pipeline_mode = #tpu.pipeline_mode<synchronous>, transform_indices = @transform_6, window_bounds = array<i64: 4, 8, 32>}, {pipeline_mode = #tpu.pipeline_mode<synchronous>, transform_indices = @transform_7, window_bounds = array<i64: 1, 32>}, {pipeline_mode = #tpu.pipeline_mode<synchronous>, transform_indices = @transform_8, window_bounds = array<i64: 4, 32, 8>}, {pipeline_mode = #tpu.pipeline_mode<synchronous>, transform_indices = @transform_9, window_bounds = array<i64: 4, 1, 8>}, {pipeline_mode = #tpu.pipeline_mode<synchronous>, transform_indices = @transform_10, window_bounds = array<i64: 4, 32, 16>}, {pipeline_mode = #tpu.pipeline_mode<synchronous>, transform_indices = @transform_11, window_bounds = array<i64: 4, 1, 16>}, {pipeline_mode = #tpu.pipeline_mode<synchronous>, transform_indices = @transform_12, window_bounds = array<i64: 4, 8, 32>}, {pipeline_mode = #tpu.pipeline_mode<synchronous>, transform_indices = @transform_13, window_bounds = array<i64: 1, 32>}, {pipeline_mode = #tpu.pipeline_mode<synchronous>, transform_indices = @transform_14, window_bounds = array<i64: 32, 64>}, {pipeline_mode = #tpu.pipeline_mode<synchronous>, transform_indices = @transform_15, window_bounds = array<i64: 1, 64>}, {pipeline_mode = #tpu.pipeline_mode<synchronous>, transform_indices = @transform_16, window_bounds = array<i64: 64, 32>}, {pipeline_mode = #tpu.pipeline_mode<synchronous>, transform_indices = @transform_17, window_bounds = array<i64: 1, 32>}, {pipeline_mode = #tpu.pipeline_mode<synchronous>, transform_indices = @transform_18, window_bounds = array<i64: 1, 32>}, {pipeline_mode = #tpu.pipeline_mode<synchronous>, transform_indices = @transform_19, window_bounds = array<i64: 1, 32>}, {pipeline_mode = #tpu.pipeline_mode<synchronous>, transform_indices = @transform_20, window_bounds = array<i64: 1, 32>}, {pipeline_mode = #tpu.pipeline_mode<synchronous>, transform_indices = @transform_21, window_bounds = array<i64: 1, 32>}, {pipeline_mode = #tpu.pipeline_mode<synchronous>, transform_indices = @transform_22, window_bounds = array<i64: 1, 32>}, {pipeline_mode = #tpu.pipeline_mode<synchronous>, transform_indices = @transform_23, window_bounds = array<i64: 1, 32>}, {transform_indices = @transform_24, window_bounds = array<i64: 1, 8, 32>}, {transform_indices = @transform_25, window_bounds = array<i64: 1, 4, 8, 8>}, {transform_indices = @transform_26, window_bounds = array<i64: 1, 4, 8, 8>}]} {
    %c0 = arith.constant 0 : index
    %c0_0 = arith.constant 0 : index
    %c0_1 = arith.constant 0 : index
    %0 = vector.load %arg1[%c0, %c0_0, %c0_1] : memref<1x8x32xf32, #tpu.memory_space<vmem>>, vector<1x8x32xf32>
    %1 = vector.shape_cast %0 : vector<1x8x32xf32> to vector<8x32xf32>
    %c0_2 = arith.constant 0 : index
    %c0_3 = arith.constant 0 : index
    %c0_4 = arith.constant 0 : index
    %2 = vector.load %arg2[%c0_2, %c0_3, %c0_4] : memref<1x8x32xf32, #tpu.memory_space<vmem>>, vector<1x8x32xf32>
    %3 = vector.shape_cast %2 : vector<1x8x32xf32> to vector<8x32xf32>
    %c0_5 = arith.constant 0 : index
    %c0_6 = arith.constant 0 : index
    %c0_7 = arith.constant 0 : index
    %4 = vector.load %arg3[%c0_5, %c0_6, %c0_7] : memref<1x8x8xf32, #tpu.memory_space<vmem>>, vector<1x8x8xf32>
    %5 = vector.shape_cast %4 : vector<1x8x8xf32> to vector<8x8xf32>
    %cst = arith.constant -1.000000e+09 : f32
    %6 = vector.broadcast %cst : f32 to vector<8x8xf32>
    %7 = arith.mulf %5, %6 : vector<8x8xf32>
    %c0_8 = arith.constant 0 : index
    %c0_9 = arith.constant 0 : index
    %c0_10 = arith.constant 0 : index
    %8 = vector.load %arg4[%c0_8, %c0_9, %c0_10] : memref<1x1x8xf32, #tpu.memory_space<vmem>>, vector<1x1x8xf32>
    %9 = vector.shape_cast %8 : vector<1x1x8xf32> to vector<1x8xf32>
    %cst_11 = arith.constant -1.000000e+09 : f32
    %10 = vector.broadcast %cst_11 : f32 to vector<1x8xf32>
    %11 = arith.mulf %9, %10 : vector<1x8xf32>
    %12 = arith.truncf %1 : vector<8x32xf32> to vector<8x32xbf16>
    %13 = arith.truncf %3 : vector<8x32xf32> to vector<8x32xbf16>
    %14 = vector.shape_cast %12 : vector<8x32xbf16> to vector<1x8x32xbf16>
    %15 = vector.shape_cast %14 : vector<1x8x32xbf16> to vector<1x8x32xbf16>
    %16 = vector.broadcast %15 : vector<1x8x32xbf16> to vector<4x8x32xbf16>
    %c0_12 = arith.constant 0 : index
    %c0_13 = arith.constant 0 : index
    %c0_14 = arith.constant 0 : index
    %17 = vector.load %arg5[%c0_12, %c0_13, %c0_14] : memref<4x32x24xbf16, #tpu.memory_space<vmem>>, vector<4x32x24xbf16>
    "tpu.trace_start"() <{level = 10 : i32, message = "hsd,hde->hse"}> : () -> ()
    %cst_15 = arith.constant dense<0.000000e+00> : vector<4x8x24xf32>
    %18 = tpu.matmul %16, %17, %cst_15 {dimension_numbers = #tpu.dot_dimension_numbers<[2], [1], [1], [2], [0, 0, 0, 1, 1, 2], [0], [0]>} : vector<4x8x32xbf16>, vector<4x32x24xbf16>, vector<4x8x24xf32> -> vector<4x8x24xf32>
    "tpu.trace_stop"() : () -> ()
    %c0_16 = arith.constant 0 : index
    %c0_17 = arith.constant 0 : index
    %c0_18 = arith.constant 0 : index
    %19 = vector.load %arg6[%c0_16, %c0_17, %c0_18] : memref<4x1x24xf32, #tpu.memory_space<vmem>>, vector<4x1x24xf32>
    %20 = vector.broadcast %19 : vector<4x1x24xf32> to vector<4x8x24xf32>
    %21 = arith.addf %18, %20 : vector<4x8x24xf32>
    %22 = vector.extract_strided_slice %21 {offsets = [0, 0, 0], sizes = [4, 8, 8], strides = [1, 1, 1]} : vector<4x8x24xf32> to vector<4x8x8xf32>
    %23 = arith.truncf %22 : vector<4x8x8xf32> to vector<4x8x8xbf16>
    %24 = vector.extract_strided_slice %21 {offsets = [0, 0, 8], sizes = [4, 8, 8], strides = [1, 1, 1]} : vector<4x8x24xf32> to vector<4x8x8xf32>
    %25 = arith.truncf %24 : vector<4x8x8xf32> to vector<4x8x8xbf16>
    %26 = vector.extract_strided_slice %21 {offsets = [0, 0, 16], sizes = [4, 8, 8], strides = [1, 1, 1]} : vector<4x8x24xf32> to vector<4x8x8xf32>
    %27 = arith.truncf %26 : vector<4x8x8xf32> to vector<4x8x8xbf16>
    "tpu.trace_start"() <{level = 10 : i32, message = "hqd,hkd->hqk"}> : () -> ()
    %cst_19 = arith.constant dense<0.000000e+00> : vector<4x8x8xf32>
    %28 = tpu.matmul %23, %25, %cst_19 {dimension_numbers = #tpu.dot_dimension_numbers<[2], [2], [1], [1], [0, 0, 0, 1, 1, 1], [0], [0]>} : vector<4x8x8xbf16>, vector<4x8x8xbf16>, vector<4x8x8xf32> -> vector<4x8x8xf32>
    "tpu.trace_stop"() : () -> ()
    %cst_20 = arith.constant 0.353553385 : f32
    %29 = vector.broadcast %cst_20 : f32 to vector<4x8x8xf32>
    %30 = arith.mulf %28, %29 : vector<4x8x8xf32>
    %31 = vector.shape_cast %7 : vector<8x8xf32> to vector<1x8x8xf32>
    %32 = vector.broadcast %31 : vector<1x8x8xf32> to vector<4x8x8xf32>
    %33 = arith.addf %30, %32 : vector<4x8x8xf32>
    %cst_21 = arith.constant dense<0xFF800000> : vector<4x8xf32>
    %34 = vector.multi_reduction <maximumf>, %33, %cst_21 [2] : vector<4x8x8xf32> to vector<4x8xf32>
    %35 = vector.shape_cast %34 : vector<4x8xf32> to vector<4x8x1xf32>
    %36 = vector.broadcast %35 : vector<4x8x1xf32> to vector<4x8x8xf32>
    %37 = arith.subf %33, %36 : vector<4x8x8xf32>
    %38 = math.exp %37 : vector<4x8x8xf32>
    %cst_22 = arith.constant dense<0.000000e+00> : vector<4x8xf32>
    %39 = vector.multi_reduction <add>, %38, %cst_22 [2] : vector<4x8x8xf32> to vector<4x8xf32>
    %40 = vector.shape_cast %39 : vector<4x8xf32> to vector<4x8x1xf32>
    %41 = vector.broadcast %40 : vector<4x8x1xf32> to vector<4x8x8xf32>
    %42 = arith.divf %38, %41 : vector<4x8x8xf32>
    %43 = arith.truncf %42 : vector<4x8x8xf32> to vector<4x8x8xbf16>
    "tpu.trace_start"() <{level = 10 : i32, message = "hqk,hkd->hqd"}> : () -> ()
    %cst_23 = arith.constant dense<0.000000e+00> : vector<4x8x8xf32>
    %44 = tpu.matmul %43, %27, %cst_23 {dimension_numbers = #tpu.dot_dimension_numbers<[2], [1], [1], [2], [0, 0, 0, 1, 1, 2], [0], [0]>} : vector<4x8x8xbf16>, vector<4x8x8xbf16>, vector<4x8x8xf32> -> vector<4x8x8xf32>
    "tpu.trace_stop"() : () -> ()
    %45 = arith.truncf %44 : vector<4x8x8xf32> to vector<4x8x8xbf16>
    %c0_24 = arith.constant 0 : index
    %c0_25 = arith.constant 0 : index
    %c0_26 = arith.constant 0 : index
    %46 = vector.load %arg7[%c0_24, %c0_25, %c0_26] : memref<4x8x32xbf16, #tpu.memory_space<vmem>>, vector<4x8x32xbf16>
    "tpu.trace_start"() <{level = 10 : i32, message = "hqd,hde->hqe"}> : () -> ()
    %cst_27 = arith.constant dense<0.000000e+00> : vector<4x8x32xf32>
    %47 = tpu.matmul %45, %46, %cst_27 {dimension_numbers = #tpu.dot_dimension_numbers<[2], [1], [1], [2], [0, 0, 0, 1, 1, 2], [0], [0]>} : vector<4x8x8xbf16>, vector<4x8x32xbf16>, vector<4x8x32xf32> -> vector<4x8x32xf32>
    "tpu.trace_stop"() : () -> ()
    %48 = vector.extract_strided_slice %47 {offsets = [0, 0, 0], sizes = [1, 8, 32], strides = [1, 1, 1]} : vector<4x8x32xf32> to vector<1x8x32xf32>
    %49 = vector.shape_cast %48 : vector<1x8x32xf32> to vector<8x32xf32>
    %50 = vector.extract_strided_slice %47 {offsets = [1, 0, 0], sizes = [1, 8, 32], strides = [1, 1, 1]} : vector<4x8x32xf32> to vector<1x8x32xf32>
    %51 = vector.shape_cast %50 : vector<1x8x32xf32> to vector<8x32xf32>
    %52 = arith.addf %49, %51 : vector<8x32xf32>
    %53 = vector.extract_strided_slice %47 {offsets = [2, 0, 0], sizes = [1, 8, 32], strides = [1, 1, 1]} : vector<4x8x32xf32> to vector<1x8x32xf32>
    %54 = vector.shape_cast %53 : vector<1x8x32xf32> to vector<8x32xf32>
    %55 = arith.addf %52, %54 : vector<8x32xf32>
    %56 = vector.extract_strided_slice %47 {offsets = [3, 0, 0], sizes = [1, 8, 32], strides = [1, 1, 1]} : vector<4x8x32xf32> to vector<1x8x32xf32>
    %57 = vector.shape_cast %56 : vector<1x8x32xf32> to vector<8x32xf32>
    %58 = arith.addf %55, %57 : vector<8x32xf32>
    %c0_28 = arith.constant 0 : index
    %c0_29 = arith.constant 0 : index
    %59 = vector.load %arg8[%c0_28, %c0_29] : memref<1x32xf32, #tpu.memory_space<vmem>>, vector<1x32xf32>
    %60 = vector.broadcast %59 : vector<1x32xf32> to vector<8x32xf32>
    %61 = arith.addf %58, %60 : vector<8x32xf32>
    %62 = arith.addf %1, %61 : vector<8x32xf32>
    %c0_30 = arith.constant 0 : index
    %c0_31 = arith.constant 0 : index
    %63 = vector.load %arg19[%c0_30, %c0_31] : memref<1x32xf32, #tpu.memory_space<vmem>>, vector<1x32xf32>
    %c0_32 = arith.constant 0 : index
    %c0_33 = arith.constant 0 : index
    %64 = vector.load %arg20[%c0_32, %c0_33] : memref<1x32xf32, #tpu.memory_space<vmem>>, vector<1x32xf32>
    %cst_34 = arith.constant dense<0.000000e+00> : vector<8xf32>
    %65 = vector.multi_reduction <add>, %62, %cst_34 [1] : vector<8x32xf32> to vector<8xf32>
    %66 = vector.shape_cast %65 : vector<8xf32> to vector<8x1xf32>
    %cst_35 = arith.constant 3.200000e+01 : f32
    %67 = vector.broadcast %cst_35 : f32 to vector<8x1xf32>
    %68 = arith.divf %66, %67 : vector<8x1xf32>
    %69 = vector.broadcast %68 : vector<8x1xf32> to vector<8x32xf32>
    %70 = arith.subf %62, %69 : vector<8x32xf32>
    %71 = arith.mulf %70, %70 : vector<8x32xf32>
    %cst_36 = arith.constant dense<0.000000e+00> : vector<8xf32>
    %72 = vector.multi_reduction <add>, %71, %cst_36 [1] : vector<8x32xf32> to vector<8xf32>
    %73 = vector.shape_cast %72 : vector<8xf32> to vector<8x1xf32>
    %cst_37 = arith.constant 3.200000e+01 : f32
    %74 = vector.broadcast %cst_37 : f32 to vector<8x1xf32>
    %75 = arith.divf %73, %74 : vector<8x1xf32>
    %76 = vector.broadcast %68 : vector<8x1xf32> to vector<8x32xf32>
    %77 = arith.subf %62, %76 : vector<8x32xf32>
    %cst_38 = arith.constant 9.99999997E-7 : f32
    %78 = vector.broadcast %cst_38 : f32 to vector<8x1xf32>
    %79 = arith.addf %75, %78 : vector<8x1xf32>
    %80 = math.rsqrt %79 : vector<8x1xf32>
    %81 = vector.broadcast %80 : vector<8x1xf32> to vector<8x32xf32>
    %82 = arith.mulf %77, %81 : vector<8x32xf32>
    %83 = vector.broadcast %63 : vector<1x32xf32> to vector<8x32xf32>
    %84 = arith.mulf %82, %83 : vector<8x32xf32>
    %85 = vector.broadcast %64 : vector<1x32xf32> to vector<8x32xf32>
    %86 = arith.addf %84, %85 : vector<8x32xf32>
    %87 = arith.truncf %86 : vector<8x32xf32> to vector<8x32xbf16>
    %88 = vector.shape_cast %87 : vector<8x32xbf16> to vector<1x8x32xbf16>
    %89 = vector.shape_cast %88 : vector<1x8x32xbf16> to vector<1x8x32xbf16>
    %90 = vector.broadcast %89 : vector<1x8x32xbf16> to vector<4x8x32xbf16>
    %c0_39 = arith.constant 0 : index
    %c0_40 = arith.constant 0 : index
    %c0_41 = arith.constant 0 : index
    %91 = vector.load %arg9[%c0_39, %c0_40, %c0_41] : memref<4x32x8xbf16, #tpu.memory_space<vmem>>, vector<4x32x8xbf16>
    "tpu.trace_start"() <{level = 10 : i32, message = "hsd,hde->hse"}> : () -> ()
    %cst_42 = arith.constant dense<0.000000e+00> : vector<4x8x8xf32>
    %92 = tpu.matmul %90, %91, %cst_42 {dimension_numbers = #tpu.dot_dimension_numbers<[2], [1], [1], [2], [0, 0, 0, 1, 1, 2], [0], [0]>} : vector<4x8x32xbf16>, vector<4x32x8xbf16>, vector<4x8x8xf32> -> vector<4x8x8xf32>
    "tpu.trace_stop"() : () -> ()
    %c0_43 = arith.constant 0 : index
    %c0_44 = arith.constant 0 : index
    %c0_45 = arith.constant 0 : index
    %93 = vector.load %arg10[%c0_43, %c0_44, %c0_45] : memref<4x1x8xf32, #tpu.memory_space<vmem>>, vector<4x1x8xf32>
    %94 = vector.broadcast %93 : vector<4x1x8xf32> to vector<4x8x8xf32>
    %95 = arith.addf %92, %94 : vector<4x8x8xf32>
    %96 = arith.truncf %95 : vector<4x8x8xf32> to vector<4x8x8xbf16>
    %97 = vector.shape_cast %13 : vector<8x32xbf16> to vector<1x8x32xbf16>
    %98 = vector.shape_cast %97 : vector<1x8x32xbf16> to vector<1x8x32xbf16>
    %99 = vector.broadcast %98 : vector<1x8x32xbf16> to vector<4x8x32xbf16>
    %c0_46 = arith.constant 0 : index
    %c0_47 = arith.constant 0 : index
    %c0_48 = arith.constant 0 : index
    %100 = vector.load %arg11[%c0_46, %c0_47, %c0_48] : memref<4x32x16xbf16, #tpu.memory_space<vmem>>, vector<4x32x16xbf16>
    "tpu.trace_start"() <{level = 10 : i32, message = "hsd,hde->hse"}> : () -> ()
    %cst_49 = arith.constant dense<0.000000e+00> : vector<4x8x16xf32>
    %101 = tpu.matmul %99, %100, %cst_49 {dimension_numbers = #tpu.dot_dimension_numbers<[2], [1], [1], [2], [0, 0, 0, 1, 1, 2], [0], [0]>} : vector<4x8x32xbf16>, vector<4x32x16xbf16>, vector<4x8x16xf32> -> vector<4x8x16xf32>
    "tpu.trace_stop"() : () -> ()
    %c0_50 = arith.constant 0 : index
    %c0_51 = arith.constant 0 : index
    %c0_52 = arith.constant 0 : index
    %102 = vector.load %arg12[%c0_50, %c0_51, %c0_52] : memref<4x1x16xf32, #tpu.memory_space<vmem>>, vector<4x1x16xf32>
    %103 = vector.broadcast %102 : vector<4x1x16xf32> to vector<4x8x16xf32>
    %104 = arith.addf %101, %103 : vector<4x8x16xf32>
    %105 = vector.extract_strided_slice %104 {offsets = [0, 0, 0], sizes = [4, 8, 8], strides = [1, 1, 1]} : vector<4x8x16xf32> to vector<4x8x8xf32>
    %106 = arith.truncf %105 : vector<4x8x8xf32> to vector<4x8x8xbf16>
    %107 = vector.extract_strided_slice %104 {offsets = [0, 0, 8], sizes = [4, 8, 8], strides = [1, 1, 1]} : vector<4x8x16xf32> to vector<4x8x8xf32>
    %108 = arith.truncf %107 : vector<4x8x8xf32> to vector<4x8x8xbf16>
    "tpu.trace_start"() <{level = 10 : i32, message = "hqd,hkd->hqk"}> : () -> ()
    %cst_53 = arith.constant dense<0.000000e+00> : vector<4x8x8xf32>
    %109 = tpu.matmul %96, %106, %cst_53 {dimension_numbers = #tpu.dot_dimension_numbers<[2], [2], [1], [1], [0, 0, 0, 1, 1, 1], [0], [0]>} : vector<4x8x8xbf16>, vector<4x8x8xbf16>, vector<4x8x8xf32> -> vector<4x8x8xf32>
    "tpu.trace_stop"() : () -> ()
    %cst_54 = arith.constant 0.353553385 : f32
    %110 = vector.broadcast %cst_54 : f32 to vector<4x8x8xf32>
    %111 = arith.mulf %109, %110 : vector<4x8x8xf32>
    %112 = vector.shape_cast %11 : vector<1x8xf32> to vector<1x1x8xf32>
    %113 = vector.broadcast %112 : vector<1x1x8xf32> to vector<4x8x8xf32>
    %114 = arith.addf %111, %113 : vector<4x8x8xf32>
    %cst_55 = arith.constant dense<0xFF800000> : vector<4x8xf32>
    %115 = vector.multi_reduction <maximumf>, %114, %cst_55 [2] : vector<4x8x8xf32> to vector<4x8xf32>
    %116 = vector.shape_cast %115 : vector<4x8xf32> to vector<4x8x1xf32>
    %117 = vector.broadcast %116 : vector<4x8x1xf32> to vector<4x8x8xf32>
    %118 = arith.subf %114, %117 : vector<4x8x8xf32>
    %119 = math.exp %118 : vector<4x8x8xf32>
    %cst_56 = arith.constant dense<0.000000e+00> : vector<4x8xf32>
    %120 = vector.multi_reduction <add>, %119, %cst_56 [2] : vector<4x8x8xf32> to vector<4x8xf32>
    %121 = vector.shape_cast %120 : vector<4x8xf32> to vector<4x8x1xf32>
    %122 = vector.broadcast %121 : vector<4x8x1xf32> to vector<4x8x8xf32>
    %123 = arith.divf %119, %122 : vector<4x8x8xf32>
    %124 = arith.truncf %123 : vector<4x8x8xf32> to vector<4x8x8xbf16>
    "tpu.trace_start"() <{level = 10 : i32, message = "hqk,hkd->hqd"}> : () -> ()
    %cst_57 = arith.constant dense<0.000000e+00> : vector<4x8x8xf32>
    %125 = tpu.matmul %124, %108, %cst_57 {dimension_numbers = #tpu.dot_dimension_numbers<[2], [1], [1], [2], [0, 0, 0, 1, 1, 2], [0], [0]>} : vector<4x8x8xbf16>, vector<4x8x8xbf16>, vector<4x8x8xf32> -> vector<4x8x8xf32>
    "tpu.trace_stop"() : () -> ()
    %126 = arith.truncf %125 : vector<4x8x8xf32> to vector<4x8x8xbf16>
    %c0_58 = arith.constant 0 : index
    %c0_59 = arith.constant 0 : index
    %c0_60 = arith.constant 0 : index
    %127 = vector.load %arg13[%c0_58, %c0_59, %c0_60] : memref<4x8x32xbf16, #tpu.memory_space<vmem>>, vector<4x8x32xbf16>
    "tpu.trace_start"() <{level = 10 : i32, message = "hqd,hde->hqe"}> : () -> ()
    %cst_61 = arith.constant dense<0.000000e+00> : vector<4x8x32xf32>
    %128 = tpu.matmul %126, %127, %cst_61 {dimension_numbers = #tpu.dot_dimension_numbers<[2], [1], [1], [2], [0, 0, 0, 1, 1, 2], [0], [0]>} : vector<4x8x8xbf16>, vector<4x8x32xbf16>, vector<4x8x32xf32> -> vector<4x8x32xf32>
    "tpu.trace_stop"() : () -> ()
    %129 = vector.extract_strided_slice %128 {offsets = [0, 0, 0], sizes = [1, 8, 32], strides = [1, 1, 1]} : vector<4x8x32xf32> to vector<1x8x32xf32>
    %130 = vector.shape_cast %129 : vector<1x8x32xf32> to vector<8x32xf32>
    %131 = vector.extract_strided_slice %128 {offsets = [1, 0, 0], sizes = [1, 8, 32], strides = [1, 1, 1]} : vector<4x8x32xf32> to vector<1x8x32xf32>
    %132 = vector.shape_cast %131 : vector<1x8x32xf32> to vector<8x32xf32>
    %133 = arith.addf %130, %132 : vector<8x32xf32>
    %134 = vector.extract_strided_slice %128 {offsets = [2, 0, 0], sizes = [1, 8, 32], strides = [1, 1, 1]} : vector<4x8x32xf32> to vector<1x8x32xf32>
    %135 = vector.shape_cast %134 : vector<1x8x32xf32> to vector<8x32xf32>
    %136 = arith.addf %133, %135 : vector<8x32xf32>
    %137 = vector.extract_strided_slice %128 {offsets = [3, 0, 0], sizes = [1, 8, 32], strides = [1, 1, 1]} : vector<4x8x32xf32> to vector<1x8x32xf32>
    %138 = vector.shape_cast %137 : vector<1x8x32xf32> to vector<8x32xf32>
    %139 = arith.addf %136, %138 : vector<8x32xf32>
    %c0_62 = arith.constant 0 : index
    %c0_63 = arith.constant 0 : index
    %140 = vector.load %arg14[%c0_62, %c0_63] : memref<1x32xf32, #tpu.memory_space<vmem>>, vector<1x32xf32>
    %141 = vector.broadcast %140 : vector<1x32xf32> to vector<8x32xf32>
    %142 = arith.addf %139, %141 : vector<8x32xf32>
    %143 = arith.addf %86, %142 : vector<8x32xf32>
    %c0_64 = arith.constant 0 : index
    %c0_65 = arith.constant 0 : index
    %144 = vector.load %arg21[%c0_64, %c0_65] : memref<1x32xf32, #tpu.memory_space<vmem>>, vector<1x32xf32>
    %c0_66 = arith.constant 0 : index
    %c0_67 = arith.constant 0 : index
    %145 = vector.load %arg22[%c0_66, %c0_67] : memref<1x32xf32, #tpu.memory_space<vmem>>, vector<1x32xf32>
    %cst_68 = arith.constant dense<0.000000e+00> : vector<8xf32>
    %146 = vector.multi_reduction <add>, %143, %cst_68 [1] : vector<8x32xf32> to vector<8xf32>
    %147 = vector.shape_cast %146 : vector<8xf32> to vector<8x1xf32>
    %cst_69 = arith.constant 3.200000e+01 : f32
    %148 = vector.broadcast %cst_69 : f32 to vector<8x1xf32>
    %149 = arith.divf %147, %148 : vector<8x1xf32>
    %150 = vector.broadcast %149 : vector<8x1xf32> to vector<8x32xf32>
    %151 = arith.subf %143, %150 : vector<8x32xf32>
    %152 = arith.mulf %151, %151 : vector<8x32xf32>
    %cst_70 = arith.constant dense<0.000000e+00> : vector<8xf32>
    %153 = vector.multi_reduction <add>, %152, %cst_70 [1] : vector<8x32xf32> to vector<8xf32>
    %154 = vector.shape_cast %153 : vector<8xf32> to vector<8x1xf32>
    %cst_71 = arith.constant 3.200000e+01 : f32
    %155 = vector.broadcast %cst_71 : f32 to vector<8x1xf32>
    %156 = arith.divf %154, %155 : vector<8x1xf32>
    %157 = vector.broadcast %149 : vector<8x1xf32> to vector<8x32xf32>
    %158 = arith.subf %143, %157 : vector<8x32xf32>
    %cst_72 = arith.constant 9.99999997E-7 : f32
    %159 = vector.broadcast %cst_72 : f32 to vector<8x1xf32>
    %160 = arith.addf %156, %159 : vector<8x1xf32>
    %161 = math.rsqrt %160 : vector<8x1xf32>
    %162 = vector.broadcast %161 : vector<8x1xf32> to vector<8x32xf32>
    %163 = arith.mulf %158, %162 : vector<8x32xf32>
    %164 = vector.broadcast %144 : vector<1x32xf32> to vector<8x32xf32>
    %165 = arith.mulf %163, %164 : vector<8x32xf32>
    %166 = vector.broadcast %145 : vector<1x32xf32> to vector<8x32xf32>
    %167 = arith.addf %165, %166 : vector<8x32xf32>
    %168 = arith.truncf %167 : vector<8x32xf32> to vector<8x32xbf16>
    %c0_73 = arith.constant 0 : index
    %c0_74 = arith.constant 0 : index
    %169 = vector.load %arg15[%c0_73, %c0_74] : memref<32x64xbf16, #tpu.memory_space<vmem>>, vector<32x64xbf16>
    %cst_75 = arith.constant dense<0.000000e+00> : vector<8x64xf32>
    %170 = tpu.matmul %168, %169, %cst_75 {dimension_numbers = #tpu.dot_dimension_numbers<[1], [0], [0], [1], [0, 0, 1, 1], [], []>} : vector<8x32xbf16>, vector<32x64xbf16>, vector<8x64xf32> -> vector<8x64xf32>
    %c0_76 = arith.constant 0 : index
    %c0_77 = arith.constant 0 : index
    %171 = vector.load %arg16[%c0_76, %c0_77] : memref<1x64xf32, #tpu.memory_space<vmem>>, vector<1x64xf32>
    %172 = vector.broadcast %171 : vector<1x64xf32> to vector<8x64xf32>
    %173 = arith.addf %170, %172 : vector<8x64xf32>
    %cst_78 = arith.constant 0.000000e+00 : f32
    %174 = vector.broadcast %cst_78 : f32 to vector<8x64xf32>
    %175 = arith.maximumf %173, %174 : vector<8x64xf32>
    %176 = arith.truncf %175 : vector<8x64xf32> to vector<8x64xbf16>
    %c0_79 = arith.constant 0 : index
    %c0_80 = arith.constant 0 : index
    %177 = vector.load %arg17[%c0_79, %c0_80] : memref<64x32xbf16, #tpu.memory_space<vmem>>, vector<64x32xbf16>
    %cst_81 = arith.constant dense<0.000000e+00> : vector<8x32xf32>
    %178 = tpu.matmul %176, %177, %cst_81 {dimension_numbers = #tpu.dot_dimension_numbers<[1], [0], [0], [1], [0, 0, 1, 1], [], []>} : vector<8x64xbf16>, vector<64x32xbf16>, vector<8x32xf32> -> vector<8x32xf32>
    %c0_82 = arith.constant 0 : index
    %c0_83 = arith.constant 0 : index
    %179 = vector.load %arg18[%c0_82, %c0_83] : memref<1x32xf32, #tpu.memory_space<vmem>>, vector<1x32xf32>
    %180 = vector.broadcast %179 : vector<1x32xf32> to vector<8x32xf32>
    %181 = arith.addf %178, %180 : vector<8x32xf32>
    %182 = arith.addf %167, %181 : vector<8x32xf32>
    %c0_84 = arith.constant 0 : index
    %c0_85 = arith.constant 0 : index
    %183 = vector.load %arg23[%c0_84, %c0_85] : memref<1x32xf32, #tpu.memory_space<vmem>>, vector<1x32xf32>
    %c0_86 = arith.constant 0 : index
    %c0_87 = arith.constant 0 : index
    %184 = vector.load %arg24[%c0_86, %c0_87] : memref<1x32xf32, #tpu.memory_space<vmem>>, vector<1x32xf32>
    %cst_88 = arith.constant dense<0.000000e+00> : vector<8xf32>
    %185 = vector.multi_reduction <add>, %182, %cst_88 [1] : vector<8x32xf32> to vector<8xf32>
    %186 = vector.shape_cast %185 : vector<8xf32> to vector<8x1xf32>
    %cst_89 = arith.constant 3.200000e+01 : f32
    %187 = vector.broadcast %cst_89 : f32 to vector<8x1xf32>
    %188 = arith.divf %186, %187 : vector<8x1xf32>
    %189 = vector.broadcast %188 : vector<8x1xf32> to vector<8x32xf32>
    %190 = arith.subf %182, %189 : vector<8x32xf32>
    %191 = arith.mulf %190, %190 : vector<8x32xf32>
    %cst_90 = arith.constant dense<0.000000e+00> : vector<8xf32>
    %192 = vector.multi_reduction <add>, %191, %cst_90 [1] : vector<8x32xf32> to vector<8xf32>
    %193 = vector.shape_cast %192 : vector<8xf32> to vector<8x1xf32>
    %cst_91 = arith.constant 3.200000e+01 : f32
    %194 = vector.broadcast %cst_91 : f32 to vector<8x1xf32>
    %195 = arith.divf %193, %194 : vector<8x1xf32>
    %196 = vector.broadcast %188 : vector<8x1xf32> to vector<8x32xf32>
    %197 = arith.subf %182, %196 : vector<8x32xf32>
    %cst_92 = arith.constant 9.99999997E-7 : f32
    %198 = vector.broadcast %cst_92 : f32 to vector<8x1xf32>
    %199 = arith.addf %195, %198 : vector<8x1xf32>
    %200 = math.rsqrt %199 : vector<8x1xf32>
    %201 = vector.broadcast %200 : vector<8x1xf32> to vector<8x32xf32>
    %202 = arith.mulf %197, %201 : vector<8x32xf32>
    %203 = vector.broadcast %183 : vector<1x32xf32> to vector<8x32xf32>
    %204 = arith.mulf %202, %203 : vector<8x32xf32>
    %205 = vector.broadcast %184 : vector<1x32xf32> to vector<8x32xf32>
    %206 = arith.addf %204, %205 : vector<8x32xf32>
    %c0_93 = arith.constant 0 : index
    %c0_94 = arith.constant 0 : index
    %c0_95 = arith.constant 0 : index
    %207 = vector.load %arg25[%c0_93, %c0_94, %c0_95] : memref<1x8x32xf32, #tpu.memory_space<vmem>>, vector<1x8x32xf32>
    %208 = vector.shape_cast %207 : vector<1x8x32xf32> to vector<8x32xf32>
    %209 = vector.shape_cast %206 : vector<8x32xf32> to vector<1x8x32xf32>
    tpu.vector_store %arg25[%c0_93, %c0_94, %c0_95], %209 {strides = array<i32>} : memref<1x8x32xf32, #tpu.memory_space<vmem>>, vector<1x8x32xf32>,
    %c0_96 = arith.constant 0 : index
    %c0_97 = arith.constant 0 : index
    %c0_98 = arith.constant 0 : index
    %c0_99 = arith.constant 0 : index
    %210 = vector.load %arg26[%c0_96, %c0_97, %c0_98, %c0_99] : memref<1x4x8x8xf32, #tpu.memory_space<vmem>>, vector<1x4x8x8xf32>
    %211 = vector.shape_cast %210 : vector<1x4x8x8xf32> to vector<4x8x8xf32>
    %212 = vector.shape_cast %42 : vector<4x8x8xf32> to vector<1x4x8x8xf32>
    tpu.vector_store %arg26[%c0_96, %c0_97, %c0_98, %c0_99], %212 {strides = array<i32>} : memref<1x4x8x8xf32, #tpu.memory_space<vmem>>, vector<1x4x8x8xf32>,
    %c0_100 = arith.constant 0 : index
    %c0_101 = arith.constant 0 : index
    %c0_102 = arith.constant 0 : index
    %c0_103 = arith.constant 0 : index
    %213 = vector.load %arg27[%c0_100, %c0_101, %c0_102, %c0_103] : memref<1x4x8x8xf32, #tpu.memory_space<vmem>>, vector<1x4x8x8xf32>
    %214 = vector.shape_cast %213 : vector<1x4x8x8xf32> to vector<4x8x8xf32>
    %215 = vector.shape_cast %123 : vector<4x8x8xf32> to vector<1x4x8x8xf32>
    tpu.vector_store %arg27[%c0_100, %c0_101, %c0_102, %c0_103], %215 {strides = array<i32>} : memref<1x4x8x8xf32, #tpu.memory_space<vmem>>, vector<1x4x8x8xf32>,
    return
  }
  func.func @transform_0(%arg0: i32) -> (i32, i32, i32) {
    %c0_i32 = arith.constant 0 : i32
    %c0_i32_0 = arith.constant 0 : i32
    %c0_i32_1 = arith.constant 0 : i32
    return %arg0, %c0_i32, %c0_i32_0 : i32, i32, i32
  }
  func.func @transform_1(%arg0: i32) -> (i32, i32, i32) {
    %c0_i32 = arith.constant 0 : i32
    %c0_i32_0 = arith.constant 0 : i32
    %c0_i32_1 = arith.constant 0 : i32
    return %arg0, %c0_i32, %c0_i32_0 : i32, i32, i32
  }
  func.func @transform_2(%arg0: i32) -> (i32, i32, i32) {
    %c0_i32 = arith.constant 0 : i32
    %c0_i32_0 = arith.constant 0 : i32
    %c0_i32_1 = arith.constant 0 : i32
    return %arg0, %c0_i32, %c0_i32_0 : i32, i32, i32
  }
  func.func @transform_3(%arg0: i32) -> (i32, i32, i32) {
    %c0_i32 = arith.constant 0 : i32
    %c0_i32_0 = arith.constant 0 : i32
    %c0_i32_1 = arith.constant 0 : i32
    return %arg0, %c0_i32, %c0_i32_0 : i32, i32, i32
  }
  func.func @transform_4(%arg0: i32) -> (i32, i32, i32) {
    %c0_i32 = arith.constant 0 : i32
    %c0_i32_0 = arith.constant 0 : i32
    %c0_i32_1 = arith.constant 0 : i32
    %c0_i32_2 = arith.constant 0 : i32
    return %c0_i32, %c0_i32_0, %c0_i32_1 : i32, i32, i32
  }
  func.func @transform_5(%arg0: i32) -> (i32, i32, i32) {
    %c0_i32 = arith.constant 0 : i32
    %c0_i32_0 = arith.constant 0 : i32
    %c0_i32_1 = arith.constant 0 : i32
    %c0_i32_2 = arith.constant 0 : i32
    return %c0_i32, %c0_i32_0, %c0_i32_1 : i32, i32, i32
  }
  func.func @transform_6(%arg0: i32) -> (i32, i32, i32) {
    %c0_i32 = arith.constant 0 : i32
    %c0_i32_0 = arith.constant 0 : i32
    %c0_i32_1 = arith.constant 0 : i32
    %c0_i32_2 = arith.constant 0 : i32
    return %c0_i32, %c0_i32_0, %c0_i32_1 : i32, i32, i32
  }
  func.func @transform_7(%arg0: i32) -> (i32, i32) {
    %c0_i32 = arith.constant 0 : i32
    %c0_i32_0 = arith.constant 0 : i32
    %c0_i32_1 = arith.constant 0 : i32
    return %c0_i32, %c0_i32_0 : i32, i32
  }
  func.func @transform_8(%arg0: i32) -> (i32, i32, i32) {
    %c0_i32 = arith.constant 0 : i32
    %c0_i32_0 = arith.constant 0 : i32
    %c0_i32_1 = arith.constant 0 : i32
    %c0_i32_2 = arith.constant 0 : i32
    return %c0_i32, %c0_i32_0, %c0_i32_1 : i32, i32, i32
  }
  func.func @transform_9(%arg0: i32) -> (i32, i32, i32) {
    %c0_i32 = arith.constant 0 : i32
    %c0_i32_0 = arith.constant 0 : i32
    %c0_i32_1 = arith.constant 0 : i32
    %c0_i32_2 = arith.constant 0 : i32
    return %c0_i32, %c0_i32_0, %c0_i32_1 : i32, i32, i32
  }
  func.func @transform_10(%arg0: i32) -> (i32, i32, i32) {
    %c0_i32 = arith.constant 0 : i32
    %c0_i32_0 = arith.constant 0 : i32
    %c0_i32_1 = arith.constant 0 : i32
    %c0_i32_2 = arith.constant 0 : i32
    return %c0_i32, %c0_i32_0, %c0_i32_1 : i32, i32, i32
  }
  func.func @transform_11(%arg0: i32) -> (i32, i32, i32) {
    %c0_i32 = arith.constant 0 : i32
    %c0_i32_0 = arith.constant 0 : i32
    %c0_i32_1 = arith.constant 0 : i32
    %c0_i32_2 = arith.constant 0 : i32
    return %c0_i32, %c0_i32_0, %c0_i32_1 : i32, i32, i32
  }
  func.func @transform_12(%arg0: i32) -> (i32, i32, i32) {
    %c0_i32 = arith.constant 0 : i32
    %c0_i32_0 = arith.constant 0 : i32
    %c0_i32_1 = arith.constant 0 : i32
    %c0_i32_2 = arith.constant 0 : i32
    return %c0_i32, %c0_i32_0, %c0_i32_1 : i32, i32, i32
  }
  func.func @transform_13(%arg0: i32) -> (i32, i32) {
    %c0_i32 = arith.constant 0 : i32
    %c0_i32_0 = arith.constant 0 : i32
    %c0_i32_1 = arith.constant 0 : i32
    return %c0_i32, %c0_i32_0 : i32, i32
  }
  func.func @transform_14(%arg0: i32) -> (i32, i32) {
    %c0_i32 = arith.constant 0 : i32
    %c0_i32_0 = arith.constant 0 : i32
    %c0_i32_1 = arith.constant 0 : i32
    return %c0_i32, %c0_i32_0 : i32, i32
  }
  func.func @transform_15(%arg0: i32) -> (i32, i32) {
    %c0_i32 = arith.constant 0 : i32
    %c0_i32_0 = arith.constant 0 : i32
    %c0_i32_1 = arith.constant 0 : i32
    return %c0_i32, %c0_i32_0 : i32, i32
  }
  func.func @transform_16(%arg0: i32) -> (i32, i32) {
    %c0_i32 = arith.constant 0 : i32
    %c0_i32_0 = arith.constant 0 : i32
    %c0_i32_1 = arith.constant 0 : i32
    return %c0_i32, %c0_i32_0 : i32, i32
  }
  func.func @transform_17(%arg0: i32) -> (i32, i32) {
    %c0_i32 = arith.constant 0 : i32
    %c0_i32_0 = arith.constant 0 : i32
    %c0_i32_1 = arith.constant 0 : i32
    return %c0_i32, %c0_i32_0 : i32, i32
  }
  func.func @transform_18(%arg0: i32) -> (i32, i32) {
    %c0_i32 = arith.constant 0 : i32
    %c0_i32_0 = arith.constant 0 : i32
    %c0_i32_1 = arith.constant 0 : i32
    return %c0_i32, %c0_i32_0 : i32, i32
  }
  func.func @transform_19(%arg0: i32) -> (i32, i32) {
    %c0_i32 = arith.constant 0 : i32
    %c0_i32_0 = arith.constant 0 : i32
    %c0_i32_1 = arith.constant 0 : i32
    return %c0_i32, %c0_i32_0 : i32, i32
  }
  func.func @transform_20(%arg0: i32) -> (i32, i32) {
    %c0_i32 = arith.constant 0 : i32
    %c0_i32_0 = arith.constant 0 : i32
    %c0_i32_1 = arith.constant 0 : i32
    return %c0_i32, %c0_i32_0 : i32, i32
  }
  func.func @transform_21(%arg0: i32) -> (i32, i32) {
    %c0_i32 = arith.constant 0 : i32
    %c0_i32_0 = arith.constant 0 : i32
    %c0_i32_1 = arith.constant 0 : i32
    return %c0_i32, %c0_i32_0 : i32, i32
  }
  func.func @transform_22(%arg0: i32) -> (i32, i32) {
    %c0_i32 = arith.constant 0 : i32
    %c0_i32_0 = arith.constant 0 : i32
    %c0_i32_1 = arith.constant 0 : i32
    return %c0_i32, %c0_i32_0 : i32, i32
  }
  func.func @transform_23(%arg0: i32) -> (i32, i32) {
    %c0_i32 = arith.constant 0 : i32
    %c0_i32_0 = arith.constant 0 : i32
    %c0_i32_1 = arith.constant 0 : i32
    return %c0_i32, %c0_i32_0 : i32, i32
  }
  func.func @transform_24(%arg0: i32) -> (i32, i32, i32) {
    %c0_i32 = arith.constant 0 : i32
    %c0_i32_0 = arith.constant 0 : i32
    %c0_i32_1 = arith.constant 0 : i32
    return %arg0, %c0_i32, %c0_i32_0 : i32, i32, i32
  }
  func.func @transform_25(%arg0: i32) -> (i32, i32, i32, i32) {
    %c0_i32 = arith.constant 0 : i32
    %c0_i32_0 = arith.constant 0 : i32
    %c0_i32_1 = arith.constant 0 : i32
    %c0_i32_2 = arith.constant 0 : i32
    return %arg0, %c0_i32, %c0_i32_0, %c0_i32_1 : i32, i32, i32, i32
  }
  func.func @transform_26(%arg0: i32) -> (i32, i32, i32, i32) {
    %c0_i32 = arith.constant 0 : i32
    %c0_i32_0 = arith.constant 0 : i32
    %c0_i32_1 = arith.constant 0 : i32
    %c0_i32_2 = arith.constant 0 : i32
    return %arg0, %c0_i32, %c0_i32_0, %c0_i32_1 : i32, i32, i32, i32
  }
}

</mosaic_0001>

<bundles_post_ra>
// kernel: tpu_custom_call.1
= control target key start
LH: loop header
LB: loop body
LE: loop exit
PB: predicated region body
PF: predicated region fallthrough
CT: control target
= control target key end

     0   :  { %s4933_s0 = inlined_call_operand.vmem [shape: f32[2,8,32], index: 0, kind: input, shape index: {}]   ;;  %s4934_s1 = inlined_call_operand.vmem [shape: f32[2,8,32], index: 1, kind: input, shape index: {}]   ;;  %s4935_s2 = inlined_call_operand.vmem [shape: f32[2,8,8], index: 2, kind: input, shape index: {}]   ;;  %s4936_s3 = inlined_call_operand.vmem [shape: f32[2,1,8], index: 3, kind: input, shape index: {}]   ;;  %s4937_s4 = inlined_call_operand.vmem [shape: bf16[4,32,24], index: 4, kind: input, shape index: {}]   ;;  %s4938_s5 = inlined_call_operand.vmem [shape: f32[4,1,24], index: 5, kind: input, shape index: {}]   ;;  %s4939_s6 = inlined_call_operand.vmem [shape: bf16[4,8,32], index: 6, kind: input, shape index: {}]   ;;  %s4940_s7 = inlined_call_operand.vmem [shape: f32[1,32], index: 7, kind: input, shape index: {}]   ;;  %s4941_s8 = inlined_call_operand.vmem [shape: bf16[4,32,8], index: 8, kind: input, shape index: {}]   ;;  %s4942_s9 = inlined_call_operand.vmem [shape: f32[4,1,8], index: 9, kind: input, shape index: {}]   ;;  %s4943_s10 = inlined_call_operand.vmem [shape: bf16[4,32,16], index: 10, kind: input, shape index: {}]   ;;  %s4944_s11 = inlined_call_operand.vmem [shape: f32[4,1,16], index: 11, kind: input, shape index: {}]   ;;  %s4945_s12 = inlined_call_operand.vmem [shape: bf16[4,8,32], index: 12, kind: input, shape index: {}]   ;;  %s4946_s13 = inlined_call_operand.vmem [shape: f32[1,32], index: 13, kind: input, shape index: {}]   ;;  %s4947_s14 = inlined_call_operand.vmem [shape: bf16[32,64], index: 14, kind: input, shape index: {}]   ;;  %s4948_s15 = inlined_call_operand.vmem [shape: f32[1,64], index: 15, kind: input, shape index: {}]   ;;  %s4949_s16 = inlined_call_operand.vmem [shape: bf16[64,32], index: 16, kind: input, shape index: {}]   ;;  %s4950_s17 = inlined_call_operand.vmem [shape: f32[1,32], index: 17, kind: input, shape index: {}]   ;;  %s4951_s18 = inlined_call_operand.vmem [shape: f32[1,32], index: 18, kind: input, shape index: {}]   ;;  %s4952_s19 = inlined_call_operand.vmem [shape: f32[1,32], index: 19, kind: input, shape index: {}]   ;;  %s4953_s20 = inlined_call_operand.vmem [shape: f32[1,32], index: 20, kind: input, shape index: {}]   ;;  %s4954_s21 = inlined_call_operand.vmem [shape: f32[1,32], index: 21, kind: input, shape index: {}]   ;;  %s4955_s22 = inlined_call_operand.vmem [shape: f32[1,32], index: 22, kind: input, shape index: {}]   ;;  %s4956_s23 = inlined_call_operand.vmem [shape: f32[1,32], index: 23, kind: input, shape index: {}]   ;;  %s4957_s24 = inlined_call_operand.hbm [shape: f32[2,8,32], index: 24, kind: output, shape index: {0}]   ;;  %s4958_s25 = inlined_call_operand.hbm [shape: f32[2,4,8,8], index: 25, kind: output, shape index: {1}]   ;;  %s4959_s26 = inlined_call_operand.hbm [shape: f32[2,4,8,8], index: 26, kind: output, shape index: {2}]  }
   0x1   :  { %4984 = sst [smem:[#allocation16_spill]] %s4933_s0 }
   0x2   :  { %4985 = sst [smem:[#allocation17_spill]] %s4934_s1 }
   0x3   :  { %4986 = sst [smem:[#allocation18_spill]] %s4935_s2 }
   0x4   :  { %4987 = sst [smem:[#allocation19_spill]] %s4936_s3 }
   0x5   :  { %4988 = sst [smem:[#allocation20_spill]] %s4937_s4 }
   0x6   :  { %4989 = sst [smem:[#allocation21_spill]] %s4938_s5 }
   0x7   :  { %4990 = sst [smem:[#allocation22_spill]] %s4939_s6 }
   0x8   :  { %4991 = sst [smem:[#allocation23_spill]] %s4940_s7 }
   0x9   :  { %4992 = sst [smem:[#allocation24_spill]] %s4941_s8 }
   0xa   :  { %4993 = sst [smem:[#allocation25_spill]] %s4942_s9 }
   0xb   :  { %4994 = sst [smem:[#allocation26_spill]] %s4943_s10 }
   0xc   :  { %4995 = sst [smem:[#allocation27_spill]] %s4944_s11 }
   0xd   :  { %4996 = sst [smem:[#allocation28_spill]] %s4945_s12 }
   0xe   :  { %32 = vsyncpa [#allocation3], 0 }
   0xf   :  { %34 = vsyncpa [#allocation3 + $0x1], 0 }
  0x10   :  { %35 = vsyncpa [#allocation5], 0 }
  0x11   :  { %37 = vsyncpa [#allocation5 + $0x1], 0  ;;  %s4251_s27 = smov 0   ;;  %s4253_s3 = smov 0  }
  0x12   :  { %s4255_s7 = smov 0   ;;  %s4257_s28 = smov 0  }
  0x13 LB: > { %4997 = sst [smem:[#allocation9_spill]] %s4093_s27  ;;  %s4272_s8 = sadd.s32 4294967295, %s4105_s28   ;;  %s4105_s28 = sphi %s4257_s28, %s5026_s28   ;;  %s4101_s7 = sphi %s4255_s7, %s5029_s7   ;;  %s4097_s3 = sphi %s4253_s3, %s5028_s3   ;;  %s4093_s27 = sphi %s4251_s27, %s5027_s27  }
  0x14   : > { %4998 = sst [smem:[#allocation10_spill]] %s4097_s3  ;;  %s4966_s4 = sadd.s32 4294967294, %s4105_s28  }
  0x15   : > { %4999 = sst [smem:[#allocation11_spill]] %s4101_s7  ;;  %s4276_s29 = sadd.s32 1, %s4105_s28  }
  0x16   : > { %5000 = sst [smem:[#allocation12_spill]] %s4105_s28  ;;  %s574_s0 = sadd.s32 1, %s4101_s7 }
  0x17   : > { %5001 = sst [smem:[#allocation13_spill]] %s4276_s29  ;;  %s571_s9 = ssub.s32 %s4105_s28, %s4276_s29 }
  0x18   : > { %p584_p0 = scmp.ne.s32.totalorder %s4101_s7, %s4097_s3  ;;  %p572_p1 = scmp.eq.s32.totalorder %s571_s9, 0 }
  0x19   : > { %p585_p2 = scmp.eq.s32.totalorder %s4272_s8, 1  ;;  %p590_p3 = scmp.ne.s32.totalorder %s4097_s3, %s4093_s27 }
  0x1a   : > { %p591_p4 = scmp.eq.s32.totalorder %s4966_s4, 1  ;;  %p3399_p7 = scmp.ge.s32.totalorder %s4105_s28, 1 }
  0x1b   : > { %s4289_s30 = scalar_select %p572_p1, %s4101_s7, %s574_s0  }
  0x1c   : > { %p4291_p5 = por %p585_p2, %p584_p0  ;;  %p4295_p6 = por %p591_p4, %p590_p3 }
  0x1d   : > { %5002 = sst [smem:[#allocation14_spill]] %s4289_s30  ;;  %p748_p8 = scmp.lt.s32.totalorder %s4105_s28, 3 }
  0x1e   : > { %s5004_s5 = scalar_select %p4295_p6, 1, 0 }
  0x1f   : > { %p749_p9 = pnand %p3399_p7, %p748_p8 }
  0x20   : > { %5005 = sst [smem:[#allocation15_spill]] %s5004_s5  ;;  %s5006_s1 = sld [smem:[#allocation20_spill]] (!%p749_p9)  ;;  %v4107_v1 = vmov (!%p749_p9), 0.0   ;;  %vm4108_vm0 = vmmov (!%p749_p9), 0   ;;  %vm918_vm1 = vcmask (!%p749_p9), 261120   ;;  %vm1125_vm2 = vcmask (!%p749_p9), 64512  }
  0x21   : > { %752 = sbr.rel (%p749_p9) target bundleno = 3970 (0xf82), region = 116  ;;  %3600 = vmatprep.subr.bf16.mxu0 (!%p749_p9), %v4107_v1  ;;  %3608 = vmatprep.subr.bf16.mxu1 (!%p749_p9), %v4107_v1  ;;  %p838_p10 = scmp.lt.s32.totalorder (!%p749_p9), %s4272_s8, 1  ;;  %vm1380_vm3 = vcmask (!%p749_p9), 1043456   ;;  %vm3104_vm4 = vcmask (!%p749_p9), 523264  }
  0x22   : > { %3604 = vmatprep.mubr.msk.bf16.mxu0 (!%p749_p9), %vm4108_vm0, %v4107_v1  ;;  %3612 = vmatprep.mubr.msk.bf16.mxu1 (!%p749_p9), %vm4108_vm0, %v4107_v1  ;;  %s5007_s7 = sld [smem:[#allocation16_spill]] (!%p749_p9)  ;;  %s4975_s6 = smov (!%p749_p9), 120  }
  0x23   : > { %s5009_s10 = sld [smem:[#allocation18_spill]] (!%p749_p9)  ;;  %s4441_s9 = sand.u32 (!%p749_p9), 1, %s4097_s3  }
  0x24   : > { %s4974_s27 = sshll.u32 (!%p749_p9), %s4441_s9, 5  ;;  %s5012_s5 = sld [smem:[#allocation24_spill]] (!%p749_p9) }
  0x25   : > { %s4446_s28 = scalar_lea.vmem (!%p749_p9), [#allocation4], %s4974_s27  ;;  %s5015_s11 = sld [smem:[#allocation27_spill]] (!%p749_p9) }
  0x26   : > { %v3915_v0 = vld [vmem:[%s5006_s1] sm:$0xff] (!%p749_p9)   ;;  %v3916_v2 = vld [vmem:[%s5006_s1 + $0x10] sm:$0xff] (!%p749_p9)   ;;  %v3917_v3 = vld [vmem:[%s5006_s1 + $0x8] sm:$0xff] (!%p749_p9)   ;;  %s5016_s27 = sld [smem:[#allocation25_spill]] (!%p749_p9)  ;;  %s5020_s3 = sshll.u32 (!%p749_p9), %s4441_s9, 5 }
  0x27   : > { %3601 = vmatpush3.bf16.msra.mxu0 (!%p749_p9), %v3915_v0  ;;  %3609 = vmatpush3.bf16.msra.mxu1 (!%p749_p9), %v3916_v2  ;;  %v3918_v4 = vld [vmem:[%s5006_s1 + $0x18] sm:$0xff] (!%p749_p9)   ;;  %v3919_v5 = vld [vmem:[%s5006_s1 + $0x20] sm:$0xff] (!%p749_p9)   ;;  %v3920_v7 = vld [vmem:[%s5006_s1 + $0x30] sm:$0xff] (!%p749_p9)   ;;  %s5021_s12 = sld [smem:[#allocation28_spill]] (!%p749_p9) }
  0x28   : > { %3602 = vmatprep.subr.bf16.mxu0 %v4107_v1  ;;  %3610 = vmatprep.subr.bf16.mxu1 %v4107_v1  ;;  %s4321_s0 = scalar_select %p838_p10, %s4272_s8, 1  ;;  %v3921_v9 = vld [vmem:[%s5006_s1 + $0x28] sm:$0xff]   ;;  %v3922_v10 = vld [vmem:[%s5006_s1 + $0x38] sm:$0xff]  }
  0x2a   : > { %s4326_s4 = sshll.u32 %s4321_s0, 3 }
  0x2b   : > { %3603 = vmatpush3.bf16.msra.mxu0 %v3917_v3  ;;  %3611 = vmatpush3.bf16.msra.mxu1 %v3918_v4  ;;  %s841_s29 = scalar_lea.vmem %s5007_s7, %s4326_s4  ;;  %s849_s30 = scalar_lea.vmem %s5009_s10, %s4326_s4 }
  0x2c   : > { %3616 = vmatprep.subr.bf16.mxu0 %v4107_v1  ;;  %v4336_v6 = vld [vmem:[%s841_s29] sm:$0xff]  ;;  %3624 = vmatprep.subr.bf16.mxu1 %v4107_v1  ;;  %s5008_s29 = sld [smem:[#allocation21_spill]]  ;;  %s4110_s7 = smov 112  }
  0x2d   : > { %v860_v8 = vpack.c.bf16 %v4336_v6, %v4336_v6  ;;  %v856_v47 = vld [vmem:[%s849_s30] sm:$0xff]  ;;  %s5010_s30 = sld [smem:[#allocation22_spill]]  ;;  %s5011_s10 = sld [smem:[#allocation23_spill]] }
  0x2e   : > { %v857_v48 = vmul.f32 -1e+09, %v856_v47  ;;  %s5017_s1 = smov %s5016_s27 }
  0x2f   : > { %3605 = vmatmul.mubr.msk.bf16.vlgmr.msra.gmra.mrb[0].mxu0 %vm918_vm1, %v860_v8  ;;  %3613 = vmatmul.mubr.msk.bf16.vlgmr.msra.gmra.mrb[0].mxu1 %vm918_vm1, %v860_v8 }
  0x30   : > { %3617 = vmatpush3.bf16.msra.mxu0 %v3919_v5  ;;  %3625 = vmatpush3.bf16.msra.mxu1 %v3920_v7 }
  0x31   : > { %3618 = vmatprep.subr.bf16.mxu0 %v4107_v1  ;;  %3626 = vmatprep.subr.bf16.mxu1 %v4107_v1 }
  0x32   : > { %3620 = vmatprep.mubr.msk.bf16.mxu0 %vm4108_vm0, %v4107_v1  ;;  %3628 = vmatprep.mubr.msk.bf16.mxu1 %vm4108_vm0, %v4107_v1  ;;  %v3406_v11 = vld [vmem:[%s5008_s29] ss:$0 sm:$0xff]  ;;  %v3407_v12 = vld [vmem:[%s5008_s29 + $0x1] ss:$0 sm:$0xff]  ;;  %v3408_v25 = vld [vmem:[%s5008_s29 + $0x2] ss:$0 sm:$0xff] }
  0x33   : > { %v3409_v26 = vld [vmem:[%s5008_s29 + $0x3] ss:$0 sm:$0xff]  ;;  %s3506_s29 = sshll.u32 %s4272_s8, 9 }
  0x34   : > { %3619 = vmatpush3.bf16.msra.mxu0 %v3921_v9  ;;  %3627 = vmatpush3.bf16.msra.mxu1 %v3922_v10 }
  0x35   : > { %3632 = vmatprep.subr.bf16.mxu0 %v4107_v1  ;;  %3638 = vmatprep.subr.bf16.mxu1 %v4107_v1 }
  0x37   : > { %3621 = vmatmul.mubr.msk.bf16.vlgmr.msra.gmra.mrb[4].mxu0 %vm918_vm1, %v860_v8  ;;  %3629 = vmatmul.mubr.msk.bf16.vlgmr.msra.gmra.mrb[4].mxu1 %vm918_vm1, %v860_v8 }
  0x38   : > { %3634 = vmatprep.mubr.msk.bf16.mxu0 %vm4108_vm0, %v4107_v1  ;;  %3640 = vmatprep.mubr.msk.bf16.mxu1 %vm4108_vm0, %v4107_v1 }
 0x102   : > { %v956_v13 = vpop.f32.mrb[0].mxu0  ;;  %v1008_v14 = vpop.f32.mrb[0].mxu1 }
 0x103   : > { %v957_v15 = vadd.f32 %v3406_v11, %v956_v13  ;;  %v3606_v16 = vpop.f32.mrb[1].mxu0  ;;  %v1009_v17 = vadd.f32 %v3407_v12, %v1008_v14  ;;  %v3614_v18 = vpop.f32.mrb[1].mxu1 }
 0x104   : > { %v959_v19 = vpop.f32.mrb[2].mxu0  ;;  %v1011_v20 = vpop.f32.mrb[2].mxu1 }
 0x105   : > { %v4372_v21 = vpack.c.bf16 %v957_v15, %v957_v15  ;;  %v3607_v22 = vpop.f32.mrb[3].mxu0  ;;  %v3615_v23 = vpop.f32.mrb[3].mxu1  ;;  %v4374_v24 = vpack.c.bf16 %v1009_v17, %v1009_v17 }
 0x107   : > { %1123 = vrot.lane.b32.xlu0 %v4372_v21, %s4975_s6 }
 0x10a   : > { %v1060_v27 = vpop.f32.mrb[4].mxu0  ;;  %v1112_v28 = vpop.f32.mrb[4].mxu1 }
 0x10b   : > { %v1061_v29 = vadd.f32 %v3408_v25, %v1060_v27  ;;  %v1113_v30 = vadd.f32 %v3409_v26, %v1112_v28  ;;  %1173 = vrot.lane.b32.xlu0 %v4374_v24, %s4975_s6  ;;  %v3622_v31 = vpop.f32.mrb[5].mxu0  ;;  %v3630_v32 = vpop.f32.mrb[5].mxu1 }
 0x10c   : > { %v1063_v33 = vpop.f32.mrb[6].mxu0  ;;  %v1115_v34 = vpop.f32.mrb[6].mxu1 }
 0x10d   : > { %v4386_v35 = vpack.c.bf16 %v1061_v29, %v1061_v29  ;;  %v3623_v36 = vpop.f32.mrb[7].mxu0  ;;  %v3631_v37 = vpop.f32.mrb[7].mxu1  ;;  %v4388_v38 = vpack.c.bf16 %v1113_v30, %v1113_v30 }
 0x10f   : > { %1222 = vrot.lane.b32.xlu1 %v4386_v35, %s4975_s6 }
 0x113   : > { %1271 = vrot.lane.b32.xlu1 %v4388_v38, %s4975_s6  ;;  %s5013_s6 = sld [smem:[#allocation26_spill]] }
 0x179   : > { %v1124_v39 = vpop.permute.xlu0 %1123 }
 0x17a   : > { %v1130_v40 = vsel %vm1125_vm2, %v1124_v39, 0 }
 0x17b   : > { %3633 = vmatpush3.bf16.xpose.msra.mxu0 %v1130_v40 }
 0x17c   : > { %3644 = vmatprep.subr.bf16.mxu0 %v4107_v1 }
 0x17d   : > { %v1174_v41 = vpop.permute.xlu0 %1173 }
 0x17e   : > { %v1179_v42 = vsel %vm1125_vm2, %v1174_v41, 0 }
 0x17f   : > { %3639 = vmatpush3.bf16.xpose.msra.mxu1 %v1179_v42 }
 0x180   : > { %3650 = vmatprep.subr.bf16.mxu1 %v4107_v1 }
 0x181   : > { %v1223_v43 = vpop.permute.xlu1 %1222 }
 0x182   : > { %v1228_v44 = vsel %vm1125_vm2, %v1223_v43, 0  ;;  %3635 = vmatmul.mubr.msk.bf16.vlgmr.msra.gmra.mrb[8].mxu0 %vm1125_vm2, %v4372_v21 }
 0x183   : > { %3645 = vmatpush3.bf16.xpose.msra.mxu0 %v1228_v44  ;;  %3646 = vmatprep.mubr.msk.bf16.mxu0 %vm4108_vm0, %v4107_v1 }
 0x184   : > { %3656 = vmatprep.subr.bf16.mxu0 %v4107_v1 }
 0x185   : > { %v1272_v45 = vpop.permute.xlu1 %1271 }
 0x186   : > { %v1277_v46 = vsel %vm1125_vm2, %v1272_v45, 0  ;;  %3641 = vmatmul.mubr.msk.bf16.vlgmr.msra.gmra.mrb[8].mxu1 %vm1125_vm2, %v4374_v24 }
 0x187   : > { %3651 = vmatpush3.bf16.xpose.msra.mxu1 %v1277_v46  ;;  %3652 = vmatprep.mubr.msk.bf16.mxu1 %vm4108_vm0, %v4107_v1 }
 0x188   : > { %3662 = vmatprep.subr.bf16.mxu1 %v4107_v1 }
 0x18a   : > { %3647 = vmatmul.mubr.msk.bf16.vlgmr.msra.gmra.mrb[12].mxu0 %vm1125_vm2, %v4386_v35 }
 0x18b   : > { %3658 = vmatprep.mubr.msk.bf16.mxu0 %vm4108_vm0, %v4107_v1 }
 0x18e   : > { %3653 = vmatmul.mubr.msk.bf16.vlgmr.msra.gmra.mrb[12].mxu1 %vm1125_vm2, %v4388_v38 }
 0x18f   : > { %3664 = vmatprep.mubr.msk.bf16.mxu1 %vm4108_vm0, %v4107_v1 }
 0x255   : > { %v1166_v49 = vpop.f32.mrb[8].mxu0 }
 0x256   : > { %v1319_v50 = vmul.f32 0.35355338, %v1166_v49  ;;  %v3636_v51 = vpop.f32.mrb[9].mxu0 }
 0x257   : > { %v1169_v52 = vpop.f32.mrb[10].mxu0 }
 0x258   : > { %v3637_v53 = vpop.f32.mrb[11].mxu0  ;;  %v1323_v54 = vadd.f32 %v1319_v50, %v857_v48 }
 0x259   : > { %v1215_v55 = vpop.f32.mrb[8].mxu1 }
 0x25a   : > { %v1320_v56 = vmul.f32 0.35355338, %v1215_v55  ;;  %v3642_v57 = vpop.f32.mrb[9].mxu1  ;;  %v1327_v58 = vsel %vm1125_vm2, %v1323_v54, -inf }
 0x25b   : > { %v1218_v59 = vpop.f32.mrb[10].mxu1  ;;  %1328 = vmax.xlane.f32.xlu0 %v1327_v58 }
 0x25c   : > { %v3643_v60 = vpop.f32.mrb[11].mxu1  ;;  %v1324_v61 = vadd.f32 %v1320_v56, %v857_v48  ;;  %v1572_v59 = vld [vmem:[%s5010_s30] sm:$0xf] }
 0x25d   : > { %v1264_v62 = vpop.f32.mrb[12].mxu0  ;;  %v1580_v60 = vsel %vm1380_vm3, %v1572_v59, 0 }
 0x25e   : > { %v1321_v63 = vmul.f32 0.35355338, %v1264_v62  ;;  %v3648_v0 = vpop.f32.mrb[13].mxu0  ;;  %v1330_v2 = vsel %vm1125_vm2, %v1324_v61, -inf }
 0x25f   : > { %1331 = vmax.xlane.f32.xlu1 %v1330_v2  ;;  %v1267_v3 = vpop.f32.mrb[14].mxu0 }
 0x260   : > { %v3649_v4 = vpop.f32.mrb[15].mxu0  ;;  %v1325_v5 = vadd.f32 %v1321_v63, %v857_v48  ;;  %v1574_v63 = vld [vmem:[%s5010_s30 + $0x8] sm:$0xf] }
 0x261   : > { %v1313_v7 = vpop.f32.mrb[12].mxu1  ;;  %v1672_v4 = vsel %vm1380_vm3, %v1574_v63, 0 }
 0x262   : > { %v1322_v8 = vmul.f32 0.35355338, %v1313_v7  ;;  %v3654_v9 = vpop.f32.mrb[13].mxu1  ;;  %v1333_v10 = vsel %vm1125_vm2, %v1325_v5, -inf }
 0x263   : > { %v1316_v11 = vpop.f32.mrb[14].mxu1  ;;  %1334 = vmax.xlane.f32.xlu0 %v1333_v10 }
 0x264   : > { %v3655_v12 = vpop.f32.mrb[15].mxu1  ;;  %v1326_v13 = vadd.f32 %v1322_v8, %v857_v48  ;;  %v1575_v8 = vld [vmem:[%s5010_s30 + $0xc] sm:$0xf] }
 0x265   : > { %v1718_v12 = vsel %vm1380_vm3, %v1575_v8, 0  ;;  %v3931_v8 = vld [vmem:[%s5013_s6] sm:$0xff]  }
 0x266   : > { %v1336_v14 = vsel %vm1125_vm2, %v1326_v13, -inf }
 0x267   : > { %1337 = vmax.xlane.f32.xlu0 %v1336_v14 }
 0x270   : > { %1375 = vrot.lane.b32.xlu1 %v4372_v21, %s4110_s7 }
 0x2e8   : > { %v1329_v15 = vpop.xlane.xlu0 %1328 }
 0x2e9   : > { %v1339_v16 = vsub.f32 %v1323_v54, %v1329_v15 }
 0x2eb   : > { %v1343_v17 = vmul.f32 1.442695, %v1339_v16 }
 0x2ec   : > { %v1332_v18 = vpop.xlane.xlu1 %1331 }
 0x2ed   : > { %3945 = vpow2.f32 %v1343_v17  ;;  %v1340_v19 = vsub.f32 %v1324_v61, %v1332_v18  ;;  %v1573_v61 = vld [vmem:[%s5010_s30 + $0x4] sm:$0xf]  ;;  %s5014_s30 = sld [smem:[#allocation17_spill]] }
 0x2ee   : > { %v1626_v62 = vsel %vm1380_vm3, %v1573_v61, 0 }
 0x2ef   : > { %v1345_v20 = vmul.f32 1.442695, %v1340_v19 }
 0x2f0   : > { %v1376_v22 = vpop.permute.xlu1 %1375  ;;  %v1335_v23 = vpop.xlane.xlu0 %1334 }
 0x2f1   : > { %3947 = vpow2.f32 %v1345_v20  ;;  %v1382_v25 = vsel %vm1380_vm3, %v1376_v22, 0  ;;  %v1341_v26 = vsub.f32 %v1325_v5, %v1335_v23 }
 0x2f2   : > { %3657 = vmatpush3.bf16.msra.mxu0 %v1382_v25 }
 0x2f3   : > { %v1347_v27 = vmul.f32 1.442695, %v1341_v26  ;;  %3668 = vmatprep.subr.bf16.mxu0 %v4107_v1 }
 0x2f4   : > { %v1338_v28 = vpop.xlane.xlu0 %1337 }
 0x2f5   : > { %3949 = vpow2.f32 %v1347_v27  ;;  %v1342_v21 = vsub.f32 %v1326_v13, %v1338_v28 }
 0x2f7   : > { %v3946_v29 = vpop.eup %3945  ;;  %v1349_v30 = vmul.f32 1.442695, %v1342_v21 }
 0x2f8   : > { %v1351_v31 = vsel %vm1125_vm2, %v3946_v29, 0.0 }
 0x2f9   : > { %3951 = vpow2.f32 %v1349_v30  ;;  %1352 = vadd.xlane.f32.xlu1 %v1351_v31 }
 0x2fb   : > { %v3948_v32 = vpop.eup %3947 }
 0x2fc   : > { %v1354_v33 = vsel %vm1125_vm2, %v3948_v32, 0.0 }
 0x2fd   : > { %1355 = vadd.xlane.f32.xlu0 %v1354_v33 }
 0x2ff   : > { %v3950_v34 = vpop.eup %3949 }
 0x300   : > { %v1357_v36 = vsel %vm1125_vm2, %v3950_v34, 0.0 }
 0x301   : > { %1358 = vadd.xlane.f32.xlu1 %v1357_v36 }
 0x303   : > { %v3952_v37 = vpop.eup %3951 }
 0x304   : > { %v1360_v39 = vsel %vm1125_vm2, %v3952_v37, 0.0 }
 0x305   : > { %1361 = vadd.xlane.f32.xlu0 %v1360_v39 }
 0x312   : > { %1472 = vrot.lane.b32.xlu1 %v4386_v35, %s4110_s7 }
 0x316   : > { %1520 = vrot.lane.b32.xlu1 %v4388_v38, %s4110_s7 }
 0x31b   : > { %1424 = vrot.lane.b32.xlu0 %v4374_v24, %s4110_s7 }
 0x386   : > { %v1353_v40 = vpop.xlane.xlu1 %1352 }
 0x387   : > { %3953 = vrcp.f32 %v1353_v40 }
 0x38a   : > { %v1356_v41 = vpop.xlane.xlu0 %1355 }
 0x38b   : > { %3955 = vrcp.f32 %v1356_v41 }
 0x38e   : > { %v1359_v42 = vpop.xlane.xlu1 %1358 }
 0x38f   : > { %3957 = vrcp.f32 %v1359_v42 }
 0x391   : > { %v3954_v43 = vpop.eup %3953 }
 0x392   : > { %v1364_v44 = vmul.f32 %v3954_v43, %v3946_v29  ;;  %v1473_v35 = vpop.permute.xlu1 %1472  ;;  %v1362_v45 = vpop.xlane.xlu0 %1361  ;;  %v3434_v43 = vld [vmem:[%s5011_s10] ss:$0 sm:$0xff]  ;;  %s3192_s10 = sand.u32 1, %s4272_s8  }
 0x393   : > { %3959 = vrcp.f32 %v1362_v45  ;;  %v1478_v47 = vsel %vm1380_vm3, %v1473_v35, 0 }
 0x394   : > { %3179 = vst.msk [vmem:[%s4446_s28] sm:$0xff] %vm1125_vm2, %v1364_v44  ;;  %v1371_v24 = vpack.c.bf16 %v1364_v44, %v1364_v44 }
 0x395   : > { %v3956_v38 = vpop.eup %3955 }
 0x396   : > { %v1366_v46 = vmul.f32 %v3956_v38, %v3948_v32  ;;  %3659 = vmatmul.mubr.msk.bf16.vlgmr.msra.gmra.mrb[16].mxu0 %vm1125_vm2, %v1371_v24  ;;  %v1425_v48 = vpop.permute.xlu0 %1424  ;;  %v1521_v50 = vpop.permute.xlu1 %1520 }
 0x397   : > { %3669 = vmatpush3.bf16.msra.mxu0 %v1478_v47  ;;  %v1430_v49 = vsel %vm1380_vm3, %v1425_v48, 0  ;;  %3670 = vmatprep.mubr.msk.bf16.mxu0 %vm4108_vm0, %v4107_v1  ;;  %v1526_v54 = vsel %vm1380_vm3, %v1521_v50, 0 }
 0x398   : > { %3180 = vst.msk [vmem:[%s4446_s28 + $0x8] sm:$0xff] %vm1125_vm2, %v1366_v46  ;;  %3663 = vmatpush3.bf16.msra.mxu1 %v1430_v49  ;;  %v1372_v51 = vpack.c.bf16 %v1366_v46, %v1366_v46  ;;  %3680 = vmatprep.subr.bf16.mxu0 %v4107_v1 }
 0x399   : > { %v3958_v52 = vpop.eup %3957  ;;  %3674 = vmatprep.subr.bf16.mxu1 %v4107_v1 }
 0x39a   : > { %v1368_v53 = vmul.f32 %v3958_v52, %v3950_v34 }
 0x39b   : > { %3665 = vmatmul.mubr.msk.bf16.vlgmr.msra.gmra.mrb[16].mxu1 %vm1125_vm2, %v1372_v51 }
 0x39c   : > { %3181 = vst.msk [vmem:[%s4446_s28 + $0x10] sm:$0xff] %vm1125_vm2, %v1368_v53  ;;  %3675 = vmatpush3.bf16.msra.mxu1 %v1526_v54  ;;  %v1373_v55 = vpack.c.bf16 %v1368_v53, %v1368_v53  ;;  %3676 = vmatprep.mubr.msk.bf16.mxu1 %vm4108_vm0, %v4107_v1  ;;  %v3923_v53 = vld [vmem:[%s5012_s5] sm:$0xff]   ;;  %v3924_v54 = vld [vmem:[%s5012_s5 + $0x10] sm:$0xff]  }
 0x39d   : > { %v3960_v56 = vpop.eup %3959  ;;  %3686 = vmatprep.subr.bf16.mxu1 %v4107_v1 }
 0x39e   : > { %v1370_v57 = vmul.f32 %v3960_v56, %v3952_v37  ;;  %3671 = vmatmul.mubr.msk.bf16.vlgmr.msra.gmra.mrb[20].mxu0 %vm1125_vm2, %v1373_v55  ;;  %v3926_v55 = vld [vmem:[%s5012_s5 + $0x18] sm:$0xff]  }
 0x39f   : > { %3682 = vmatprep.mubr.msk.bf16.mxu0 %vm4108_vm0, %v4107_v1  ;;  %3681 = vmatpush3.bf16.msra.mxu0 %v1580_v60  ;;  %v3435_v60 = vld [vmem:[%s4951_s18] ss:$0 sm:$0xff] }
 0x3a0   : > { %3182 = vst.msk [vmem:[%s4446_s28 + $0x18] sm:$0xff] %vm1125_vm2, %v1370_v57  ;;  %v1374_v58 = vpack.c.bf16 %v1370_v57, %v1370_v57  ;;  %3692 = vmatprep.subr.bf16.mxu0 %v4107_v1 }
 0x3a3   : > { %3677 = vmatmul.mubr.msk.bf16.vlgmr.msra.gmra.mrb[20].mxu1 %vm1125_vm2, %v1374_v58 }
 0x3a4   : > { %3688 = vmatprep.mubr.msk.bf16.mxu1 %vm4108_vm0, %v4107_v1  ;;  %3687 = vmatpush3.bf16.msra.mxu1 %v1626_v62  ;;  %v3436_v62 = vld [vmem:[%s4952_s19] ss:$0 sm:$0xff] }
 0x3a5   : > { %3698 = vmatprep.subr.bf16.mxu1 %v4107_v1 }
 0x469   : > { %v1418_v0 = vpop.f32.mrb[16].mxu0 }
 0x46a   : > { %v1568_v2 = vpack.c.bf16 %v1418_v0, %v1418_v0  ;;  %v3660_v3 = vpop.f32.mrb[17].mxu0 }
 0x46b   : > { %v1421_v5 = vpop.f32.mrb[18].mxu0  ;;  %v3928_v3 = vld [vmem:[%s5012_s5 + $0x30] sm:$0xff]  }
 0x46c   : > { %v3661_v7 = vpop.f32.mrb[19].mxu0  ;;  %3683 = vmatmul.mubr.msk.bf16.vlgmr.msra.gmra.mrb[24].mxu0 %vm1125_vm2, %v1568_v2  ;;  %v3927_v2 = vld [vmem:[%s5012_s5 + $0x20] sm:$0xff]   ;;  %v3929_v5 = vld [vmem:[%s5012_s5 + $0x28] sm:$0xff]  }
 0x46d   : > { %3693 = vmatpush3.bf16.msra.mxu0 %v1672_v4  ;;  %3694 = vmatprep.mubr.msk.bf16.mxu0 %vm4108_vm0, %v4107_v1  ;;  %v3930_v7 = vld [vmem:[%s5012_s5 + $0x38] sm:$0xff]  }
 0x46e   : > { %v1466_v9 = vpop.f32.mrb[16].mxu1  ;;  %3704 = vmatprep.subr.bf16.mxu0 %v4107_v1 }
 0x46f   : > { %v1569_v10 = vpack.c.bf16 %v1466_v9, %v1466_v9  ;;  %v3666_v11 = vpop.f32.mrb[17].mxu1  ;;  %v3932_v9 = vld [vmem:[%s5013_s6 + $0x10] sm:$0xff]  }
 0x470   : > { %v1469_v13 = vpop.f32.mrb[18].mxu1  ;;  %v3934_v11 = vld [vmem:[%s5013_s6 + $0x18] sm:$0xff]  }
 0x471   : > { %v3667_v14 = vpop.f32.mrb[19].mxu1  ;;  %v1514_v15 = vpop.f32.mrb[20].mxu0  ;;  %3689 = vmatmul.mubr.msk.bf16.vlgmr.msra.gmra.mrb[24].mxu1 %vm1125_vm2, %v1569_v10  ;;  %v3933_v10 = vld [vmem:[%s5013_s6 + $0x8] sm:$0xff]  }
 0x472   : > { %v1570_v16 = vpack.c.bf16 %v1514_v15, %v1514_v15  ;;  %v3672_v17 = vpop.f32.mrb[21].mxu0  ;;  %3699 = vmatpush3.bf16.msra.mxu1 %v1718_v12  ;;  %3700 = vmatprep.mubr.msk.bf16.mxu1 %vm4108_vm0, %v4107_v1  ;;  %v3935_v14 = vld [vmem:[%s5013_s6 + $0x20] sm:$0xff]   ;;  %v3936_v15 = vld [vmem:[%s5013_s6 + $0x30] sm:$0xff]  }
 0x473   : > { %v1517_v18 = vpop.f32.mrb[22].mxu0  ;;  %3712 = vmatprep.subr.bf16.mxu1 %v4107_v1  ;;  %v3938_v17 = vld [vmem:[%s5013_s6 + $0x38] sm:$0xff]  }
 0x474   : > { %v3673_v19 = vpop.f32.mrb[23].mxu0  ;;  %3695 = vmatmul.mubr.msk.bf16.vlgmr.msra.gmra.mrb[28].mxu0 %vm1125_vm2, %v1570_v16  ;;  %v3937_v16 = vld [vmem:[%s5013_s6 + $0x28] sm:$0xff]   ;;  %s4695_s6 = scalar_lea.vmem [#allocation6], %s5020_s3  ;;  %s3224_s3 = sshll.u32 %s4446_s28, 4  ;;  %s4811_s3 = int_to_ptr.vmem [resolvable:$true] %s3224_s3 }
 0x475   : > { %3708 = vmatprep.mubr.msk.bf16.mxu0 %vm4108_vm0, %v4107_v1  ;;  %3705 = vmatpush3.bf16.msra.mxu0 %v3923_v53  ;;  %v3456_v53 = vld [vmem:[%s5015_s11 + $0x3] ss:$0 sm:$0xff] }
 0x476   : > { %v1562_v20 = vpop.f32.mrb[20].mxu1  ;;  %3706 = vmatprep.subr.bf16.mxu0 %v4107_v1 }
 0x477   : > { %v1571_v22 = vpack.c.bf16 %v1562_v20, %v1562_v20  ;;  %v3678_v23 = vpop.f32.mrb[21].mxu1 }
 0x478   : > { %v1565_v25 = vpop.f32.mrb[22].mxu1 }
 0x479   : > { %v3679_v26 = vpop.f32.mrb[23].mxu1  ;;  %3701 = vmatmul.mubr.msk.bf16.vlgmr.msra.gmra.mrb[28].mxu1 %vm1125_vm2, %v1571_v22 }
 0x47a   : > { %3716 = vmatprep.mubr.msk.bf16.mxu1 %vm4108_vm0, %v4107_v1  ;;  %3713 = vmatpush3.bf16.msra.mxu1 %v3924_v54 }
 0x47b   : > { %3714 = vmatprep.subr.bf16.mxu1 %v4107_v1 }
 0x47e   : > { %3715 = vmatpush3.bf16.msra.mxu1 %v3926_v55 }
 0x47f   : > { %3728 = vmatprep.subr.bf16.mxu1 %v4107_v1 }
 0x53f   : > { %v1616_v27 = vpop.f32.mrb[24].mxu0 }
 0x540   : > { %v3684_v28 = vpop.f32.mrb[25].mxu0 }
 0x541   : > { %v1619_v21 = vpop.f32.mrb[26].mxu0 }
 0x542   : > { %v3685_v29 = vpop.f32.mrb[27].mxu0 }
 0x544   : > { %v1662_v30 = vpop.f32.mrb[24].mxu1 }
 0x545   : > { %v1760_v31 = vadd.f32 %v1662_v30, %v1616_v27  ;;  %v3690_v32 = vpop.f32.mrb[25].mxu1 }
 0x546   : > { %v1665_v33 = vpop.f32.mrb[26].mxu1 }
 0x547   : > { %v3691_v34 = vpop.f32.mrb[27].mxu1  ;;  %v1708_v36 = vpop.f32.mrb[28].mxu0 }
 0x548   : > { %v1761_v37 = vadd.f32 %v1760_v31, %v1708_v36  ;;  %v3696_v39 = vpop.f32.mrb[29].mxu0  ;;  %v3453_v36 = vld [vmem:[%s5015_s11] ss:$0 sm:$0xff] }
 0x549   : > { %v1711_v40 = vpop.f32.mrb[30].mxu0 }
 0x54a   : > { %v3697_v41 = vpop.f32.mrb[31].mxu0 }
 0x54c   : > { %v1754_v42 = vpop.f32.mrb[28].mxu1 }
 0x54d   : > { %v1762_v44 = vadd.f32 %v1761_v37, %v1754_v42  ;;  %v3702_v35 = vpop.f32.mrb[29].mxu1  ;;  %v3454_v37 = vld [vmem:[%s5015_s11 + $0x1] ss:$0 sm:$0xff] }
 0x54e   : > { %v1757_v45 = vpop.f32.mrb[30].mxu1 }
 0x54f   : > { %v1770_v24 = vadd.f32 %v3434_v43, %v1762_v44  ;;  %v3703_v38 = vpop.f32.mrb[31].mxu1 }
 0x551   : > { %v1771_v46 = vadd.f32 %v1770_v24, %v4336_v6  ;;  %v3925_v6 = vld [vmem:[%s5012_s5 + $0x8] sm:$0xff]   ;;  %s845_s5 = scalar_lea.vmem %s5014_s30, %s4326_s4  ;;  %s5018_s4 = sld [smem:[#allocation19_spill]] }
 0x552   : > { %3707 = vmatpush3.bf16.msra.mxu0 %v3925_v6  ;;  %v855_v12 = vld [vmem:[%s845_s5] sm:$0xff]  ;;  %s4813_s30 = scalar_lea.sflag [#allocation5], %s3192_s10  ;;  %s3983_s5 = scalar_lea.vmem %s4811_s3, 512 }
 0x553   : > { %v1774_v47 = vsel %vm918_vm1, %v1771_v46, 0.0  ;;  %3720 = vmatprep.subr.bf16.mxu0 %v4107_v1  ;;  %v861_v13 = vpack.c.bf16 %v855_v12, %v855_v12  ;;  %p3984_p11 = scmp.ne.s32.totalorder %s4811_s3, %s3983_s5 }
 0x554   : > { %1775 = vadd.xlane.f32.xlu0 %v1774_v47 }
 0x555   : > { %p3985_p12 = pnand %p3984_p11, %p4291_p5 }
 0x557   : > { %s852_s7 = scalar_lea.vmem %s5018_s4, %s4321_s0  ;;  %s5019_s0 = smov 120  }
 0x558   : > { %p3986_p13 = pneg %p3985_p12 }
 0x5e1   : > { %v1776_v48 = vpop.xlane.xlu0 %1775 }
 0x5e2   : > { %v1778_v49 = vmul.f32 0.03125, %v1776_v48  ;;  %v3437_v48 = vld [vmem:[%s5016_s27] ss:$0 sm:$0xff]  ;;  %s4111_s27 = smov [#allocation4]  }
 0x5e4   : > { %v1779_v50 = vsub.f32 %v1771_v46, %v1778_v49  ;;  %v3438_v49 = vld [vmem:[%s5017_s1 + $0x1] ss:$0 sm:$0xff] }
 0x5e6   : > { %v1780_v51 = vmul.f32 %v1779_v50, %v1779_v50 }
 0x5e8   : > { %v1781_v52 = vsel %vm918_vm1, %v1780_v51, 0.0 }
 0x5e9   : > { %1782 = vadd.xlane.f32.xlu1 %v1781_v52  ;;  %v3455_v52 = vld [vmem:[%s5015_s11 + $0x2] ss:$0 sm:$0xff] }
 0x676   : > { %v1783_v56 = vpop.xlane.xlu1 %1782 }
 0x677   : > { %v1784_v57 = vmul.f32 0.03125, %v1783_v56 }
 0x679   : > { %v1785_v58 = vadd.f32 1e-06, %v1784_v57 }
 0x67b   : > { %3961 = vrsqrt.f32 %v1785_v58 }
 0x685   : > { %v3962_v59 = vpop.eup %3961 }
 0x686   : > { %v1787_v61 = vmul.f32 %v3962_v59, %v1779_v50 }
 0x688   : > { %v1794_v63 = vmul.f32 %v3435_v60, %v1787_v61 }
 0x68a   : > { %v4534_v0 = vadd.f32 %v3436_v62, %v1794_v63 }
 0x68c   : > { %v1802_v4 = vpack.c.bf16 %v4534_v0, %v4534_v0 }
 0x68e   : > { %3709 = vmatmul.mubr.msk.bf16.vlgmr.msra.gmra.mrb[32].mxu0 %vm918_vm1, %v1802_v4  ;;  %3717 = vmatmul.mubr.msk.bf16.vlgmr.msra.gmra.mrb[32].mxu1 %vm918_vm1, %v1802_v4 }
 0x68f   : > { %3721 = vmatpush3.bf16.msra.mxu0 %v3927_v2  ;;  %3729 = vmatpush3.bf16.msra.mxu1 %v3928_v3 }
 0x690   : > { %3722 = vmatprep.subr.bf16.mxu0 %v4107_v1  ;;  %3730 = vmatprep.subr.bf16.mxu1 %v4107_v1 }
 0x691   : > { %3724 = vmatprep.mubr.msk.bf16.mxu0 %vm4108_vm0, %v4107_v1  ;;  %3732 = vmatprep.mubr.msk.bf16.mxu1 %vm4108_vm0, %v4107_v1 }
 0x693   : > { %3723 = vmatpush3.bf16.msra.mxu0 %v3929_v5  ;;  %3731 = vmatpush3.bf16.msra.mxu1 %v3930_v7 }
 0x694   : > { %3736 = vmatprep.subr.bf16.mxu0 %v4107_v1  ;;  %3744 = vmatprep.subr.bf16.mxu1 %v4107_v1 }
 0x696   : > { %3725 = vmatmul.mubr.msk.bf16.vlgmr.msra.gmra.mrb[36].mxu0 %vm918_vm1, %v1802_v4  ;;  %3733 = vmatmul.mubr.msk.bf16.vlgmr.msra.gmra.mrb[36].mxu1 %vm918_vm1, %v1802_v4 }
 0x697   : > { %3737 = vmatpush3.bf16.msra.mxu0 %v3931_v8  ;;  %3745 = vmatpush3.bf16.msra.mxu1 %v3932_v9  ;;  %v3439_v8 = vld [vmem:[%s5017_s1 + $0x2] ss:$0 sm:$0xff]  ;;  %v3440_v9 = vld [vmem:[%s5017_s1 + $0x3] ss:$0 sm:$0xff]  ;;  %s3987_s1 = sshll.u32 %s4111_s27, 4  ;;  %s3988_s1 = int_to_ptr.vmem [resolvable:$false] %s3987_s1 }
 0x698   : > { %3738 = vmatprep.subr.bf16.mxu0 %v4107_v1  ;;  %3746 = vmatprep.subr.bf16.mxu1 %v4107_v1  ;;  %s3989_s11 = scalar_lea.vmem %s3988_s1, 1024  ;;  %p3990_p0 = scmp.lt.s32.totalorder %s4811_s3, %s3988_s1 }
 0x699   : > { %3740 = vmatprep.mubr.msk.bf16.mxu0 %vm4108_vm0, %v4107_v1  ;;  %3748 = vmatprep.mubr.msk.bf16.mxu1 %vm4108_vm0, %v4107_v1  ;;  %p3991_p1 = scmp.lt.s32.totalorder %s3989_s11, %s3983_s5 }
 0x69b   : > { %3739 = vmatpush3.bf16.msra.mxu0 %v3933_v10  ;;  %3747 = vmatpush3.bf16.msra.mxu1 %v3934_v11  ;;  %p3992_p2 = por %p3991_p1, %p3990_p0 }
 0x69c   : > { %3752 = vmatprep.subr.bf16.mxu0 %v4107_v1  ;;  %3760 = vmatprep.subr.bf16.mxu1 %v4107_v1 }
 0x69d   : > { %p3993_p3 = pnand %p3992_p2, %p3986_p13 }
 0x69e   : > { %3741 = vmatmul.mubr.msk.bf16.vlgmr.msra.gmra.mrb[40].mxu0 %vm918_vm1, %v861_v13  ;;  %3749 = vmatmul.mubr.msk.bf16.vlgmr.msra.gmra.mrb[40].mxu1 %vm918_vm1, %v861_v13 }
 0x69f   : > { %3753 = vmatpush3.bf16.msra.mxu0 %v3935_v14  ;;  %3761 = vmatpush3.bf16.msra.mxu1 %v3936_v15 }
 0x6a0   : > { %3754 = vmatprep.subr.bf16.mxu0 %v4107_v1  ;;  %3762 = vmatprep.subr.bf16.mxu1 %v4107_v1 }
 0x6a1   : > { %3756 = vmatprep.mubr.msk.bf16.mxu0 %vm4108_vm0, %v4107_v1  ;;  %3764 = vmatprep.mubr.msk.bf16.mxu1 %vm4108_vm0, %v4107_v1 }
 0x6a3   : > { %3755 = vmatpush3.bf16.msra.mxu0 %v3937_v16  ;;  %3763 = vmatpush3.bf16.msra.mxu1 %v3938_v17  ;;  %v2510_v16 = vlaneseq }
 0x6a4   : > { %3768 = vmatprep.subr.bf16.mxu0 %v4107_v1  ;;  %3774 = vmatprep.subr.bf16.mxu1 %v4107_v1 }
 0x6a5   : > { %v2511_v17 = vshrl.u32 %v2510_v16, 7 }
 0x6a6   : > { %3757 = vmatmul.mubr.msk.bf16.vlgmr.msra.gmra.mrb[44].mxu0 %vm918_vm1, %v861_v13  ;;  %3765 = vmatmul.mubr.msk.bf16.vlgmr.msra.gmra.mrb[44].mxu1 %vm918_vm1, %v861_v13 }
 0x6a7   : > { %3770 = vmatprep.mubr.msk.bf16.mxu0 %vm4108_vm0, %v4107_v1  ;;  %3776 = vmatprep.mubr.msk.bf16.mxu1 %vm4108_vm0, %v4107_v1 }
 0x761   : > { %v1896_v18 = vpop.f32.mrb[32].mxu0  ;;  %v1948_v19 = vpop.f32.mrb[32].mxu1 }
 0x762   : > { %v3710_v20 = vpop.f32.mrb[33].mxu0  ;;  %v3718_v22 = vpop.f32.mrb[33].mxu1  ;;  %v1897_v54 = vadd.f32 %v3437_v48, %v1896_v18  ;;  %v1949_v6 = vadd.f32 %v3438_v49, %v1948_v19  ;;  %v858_v18 = vld [vmem:[%s852_s7] sm:$0x1] }
 0x763   : > { %v1899_v23 = vpop.f32.mrb[34].mxu0  ;;  %v1951_v25 = vpop.f32.mrb[34].mxu1  ;;  %v859_v19 = vmul.f32 -1e+09, %v858_v18  ;;  %v2512_v20 = vsub.s32 0, %v2511_v17 }
 0x764   : > { %v3711_v26 = vpop.f32.mrb[35].mxu0  ;;  %v3719_v27 = vpop.f32.mrb[35].mxu1  ;;  %v2058_v63 = vpack.c.bf16 %v1897_v54, %v1897_v54  ;;  %v2059_v2 = vpack.c.bf16 %v1949_v6, %v1949_v6 }
 0x765   : > { %v2513_v22 = vrot.slane %v859_v19, %v2512_v20 }
 0x769   : > { %v2000_v28 = vpop.f32.mrb[36].mxu0  ;;  %v2052_v21 = vpop.f32.mrb[36].mxu1 }
 0x76a   : > { %v3726_v29 = vpop.f32.mrb[37].mxu0  ;;  %v3734_v30 = vpop.f32.mrb[37].mxu1  ;;  %v2001_v12 = vadd.f32 %v3439_v8, %v2000_v28  ;;  %v2053_v13 = vadd.f32 %v3440_v9, %v2052_v21 }
 0x76b   : > { %v2003_v31 = vpop.f32.mrb[38].mxu0  ;;  %v2055_v32 = vpop.f32.mrb[38].mxu1 }
 0x76c   : > { %v3727_v33 = vpop.f32.mrb[39].mxu0  ;;  %v3735_v34 = vpop.f32.mrb[39].mxu1  ;;  %v2060_v14 = vpack.c.bf16 %v2001_v12, %v2001_v12  ;;  %v2061_v15 = vpack.c.bf16 %v2053_v13, %v2053_v13 }
 0x771   : > { %v2155_v39 = vpop.f32.mrb[40].mxu0  ;;  %v2207_v40 = vpop.f32.mrb[40].mxu1 }
 0x772   : > { %v2156_v41 = vadd.f32 %v3453_v36, %v2155_v39  ;;  %v2208_v42 = vadd.f32 %v3454_v37, %v2207_v40  ;;  %v3742_v43 = vpop.f32.mrb[41].mxu0  ;;  %v3750_v44 = vpop.f32.mrb[41].mxu1 }
 0x773   : > { %v2158_v35 = vpop.f32.mrb[42].mxu0  ;;  %v2210_v45 = vpop.f32.mrb[42].mxu1 }
 0x774   : > { %v4620_v24 = vpack.c.bf16 %v2156_v41, %v2156_v41  ;;  %v4622_v38 = vpack.c.bf16 %v2208_v42, %v2208_v42  ;;  %v3743_v46 = vpop.f32.mrb[43].mxu0  ;;  %v3751_v47 = vpop.f32.mrb[43].mxu1 }
 0x776   : > { %v2325_v50 = vsel %vm1125_vm2, %v4620_v24, 0  ;;  %v2371_v51 = vsel %vm1125_vm2, %v4622_v38, 0 }
 0x777   : > { %3769 = vmatpush3.bf16.xpose.msra.mxu0 %v2325_v50  ;;  %3775 = vmatpush3.bf16.xpose.msra.mxu1 %v2371_v51 }
 0x778   : > { %3780 = vmatprep.subr.bf16.mxu0 %v4107_v1  ;;  %3786 = vmatprep.subr.bf16.mxu1 %v4107_v1 }
 0x779   : > { %v2259_v55 = vpop.f32.mrb[44].mxu0  ;;  %v2311_v56 = vpop.f32.mrb[44].mxu1 }
 0x77a   : > { %v2260_v57 = vadd.f32 %v3455_v52, %v2259_v55  ;;  %v2312_v58 = vadd.f32 %v3456_v53, %v2311_v56  ;;  %v3766_v59 = vpop.f32.mrb[45].mxu1  ;;  %v3758_v60 = vpop.f32.mrb[45].mxu0 }
 0x77b   : > { %v2314_v61 = vpop.f32.mrb[46].mxu1  ;;  %v2262_v62 = vpop.f32.mrb[46].mxu0 }
 0x77c   : > { %v4642_v3 = vpack.c.bf16 %v2260_v57, %v2260_v57  ;;  %v4644_v4 = vpack.c.bf16 %v2312_v58, %v2312_v58  ;;  %v3767_v5 = vpop.f32.mrb[47].mxu1  ;;  %v3759_v7 = vpop.f32.mrb[47].mxu0 }
 0x77e   : > { %v2417_v10 = vsel %vm1125_vm2, %v4642_v3, 0  ;;  %v2463_v11 = vsel %vm1125_vm2, %v4644_v4, 0  ;;  %3771 = vmatmul.mubr.msk.bf16.vlgmr.msra.gmra.mrb[48].mxu0 %vm1125_vm2, %v2058_v63  ;;  %3777 = vmatmul.mubr.msk.bf16.vlgmr.msra.gmra.mrb[48].mxu1 %vm1125_vm2, %v2059_v2 }
 0x77f   : > { %3781 = vmatpush3.bf16.xpose.msra.mxu0 %v2417_v10  ;;  %3787 = vmatpush3.bf16.xpose.msra.mxu1 %v2463_v11 }
 0x780   : > { %3782 = vmatprep.mubr.msk.bf16.mxu0 %vm4108_vm0, %v4107_v1  ;;  %3788 = vmatprep.mubr.msk.bf16.mxu1 %vm4108_vm0, %v4107_v1 }
 0x781   : > { %3792 = vmatprep.subr.bf16.mxu0 %v4107_v1  ;;  %3798 = vmatprep.subr.bf16.mxu1 %v4107_v1 }
 0x786   : > { %3783 = vmatmul.mubr.msk.bf16.vlgmr.msra.gmra.mrb[52].mxu0 %vm1125_vm2, %v2060_v14  ;;  %3789 = vmatmul.mubr.msk.bf16.vlgmr.msra.gmra.mrb[52].mxu1 %vm1125_vm2, %v2061_v15 }
 0x787   : > { %3794 = vmatprep.mubr.msk.bf16.mxu0 %vm4108_vm0, %v4107_v1  ;;  %3800 = vmatprep.mubr.msk.bf16.mxu1 %vm4108_vm0, %v4107_v1 }
 0x851   : > { %v2361_v23 = vpop.f32.mrb[48].mxu0  ;;  %v2407_v25 = vpop.f32.mrb[48].mxu1 }
 0x852   : > { %v2505_v26 = vmul.f32 0.35355338, %v2361_v23  ;;  %v2506_v27 = vmul.f32 0.35355338, %v2407_v25  ;;  %v3772_v28 = vpop.f32.mrb[49].mxu0  ;;  %v3778_v21 = vpop.f32.mrb[49].mxu1 }
 0x853   : > { %v2364_v29 = vpop.f32.mrb[50].mxu0  ;;  %v2410_v30 = vpop.f32.mrb[50].mxu1 }
 0x854   : > { %v3773_v31 = vpop.f32.mrb[51].mxu0  ;;  %v3779_v32 = vpop.f32.mrb[51].mxu1  ;;  %v2515_v33 = vadd.f32 %v2513_v22, %v2505_v26  ;;  %v2516_v34 = vadd.f32 %v2513_v22, %v2506_v27 }
 0x856   : > { %v2519_v36 = vsel %vm1125_vm2, %v2515_v33, -inf  ;;  %v2522_v40 = vsel %vm1125_vm2, %v2516_v34, -inf }
 0x857   : > { %2520 = vmax.xlane.f32.xlu0 %v2519_v36  ;;  %v2768_v36 = vld [vmem:[%s5021_s12 + $0x4] sm:$0xf] }
 0x859   : > { %v2453_v37 = vpop.f32.mrb[52].mxu0  ;;  %v2499_v39 = vpop.f32.mrb[52].mxu1 }
 0x85a   : > { %v2507_v41 = vmul.f32 0.35355338, %v2453_v37  ;;  %v2508_v42 = vmul.f32 0.35355338, %v2499_v39  ;;  %v3784_v43 = vpop.f32.mrb[53].mxu0  ;;  %v3790_v44 = vpop.f32.mrb[53].mxu1 }
 0x85b   : > { %v2502_v35 = vpop.f32.mrb[54].mxu1  ;;  %2523 = vmax.xlane.f32.xlu0 %v2522_v40  ;;  %v2456_v45 = vpop.f32.mrb[54].mxu0  ;;  %v2821_v37 = vsel %vm1380_vm3, %v2768_v36, 0  ;;  %v2769_v39 = vld [vmem:[%s5021_s12 + $0x8] sm:$0xf] }
 0x85c   : > { %v3785_v46 = vpop.f32.mrb[55].mxu0  ;;  %v3791_v47 = vpop.f32.mrb[55].mxu1  ;;  %v2518_v48 = vadd.f32 %v2513_v22, %v2508_v42  ;;  %v2517_v49 = vadd.f32 %v2513_v22, %v2507_v41  ;;  %v2867_v43 = vsel %vm1380_vm3, %v2769_v39, 0  ;;  %v2770_v35 = vld [vmem:[%s5021_s12 + $0xc] sm:$0xf] }
 0x85e   : > { %v2528_v50 = vsel %vm1125_vm2, %v2518_v48, -inf  ;;  %v2525_v51 = vsel %vm1125_vm2, %v2517_v49, -inf }
 0x85f   : > { %2529 = vmax.xlane.f32.xlu0 %v2528_v50  ;;  %2526 = vmax.xlane.f32.xlu1 %v2525_v51 }
 0x870   : > { %2568 = vrot.lane.b32.xlu1 %v4620_v24, %s5019_s0 }
 0x8e4   : > { %v2521_v52 = vpop.xlane.xlu0 %2520 }
 0x8e5   : > { %v2531_v53 = vsub.f32 %v2515_v33, %v2521_v52  ;;  %v2767_v33 = vld [vmem:[%s5021_s12] sm:$0xf] }
 0x8e7   : > { %v2535_v54 = vmul.f32 1.442695, %v2531_v53 }
 0x8e8   : > { %v2524_v6 = vpop.xlane.xlu0 %2523 }
 0x8e9   : > { %3963 = vpow2.f32 %v2535_v54  ;;  %v2532_v55 = vsub.f32 %v2516_v34, %v2524_v6  ;;  %v2775_v34 = vsel %vm1380_vm3, %v2767_v33, 0 }
 0x8eb   : > { %v2537_v56 = vmul.f32 1.442695, %v2532_v55 }
 0x8ec   : > { %v2530_v57 = vpop.xlane.xlu0 %2529  ;;  %v2527_v58 = vpop.xlane.xlu1 %2526 }
 0x8ed   : > { %3965 = vpow2.f32 %v2537_v56  ;;  %v2534_v59 = vsub.f32 %v2518_v48, %v2530_v57  ;;  %v2533_v60 = vsub.f32 %v2517_v49, %v2527_v58  ;;  %v2913_v49 = vsel %vm1380_vm3, %v2770_v35, 0 }
 0x8ef   : > { %v2541_v61 = vmul.f32 1.442695, %v2534_v59  ;;  %v2539_v62 = vmul.f32 1.442695, %v2533_v60 }
 0x8f0   : > { %v2569_v63 = vpop.permute.xlu1 %2568 }
 0x8f1   : > { %3967 = vpow2.f32 %v2541_v61  ;;  %v2574_v2 = vsel %vm1380_vm3, %v2569_v63, 0 }
 0x8f2   : > { %3969 = vpow2.f32 %v2539_v62  ;;  %3793 = vmatpush3.bf16.msra.mxu0 %v2574_v2 }
 0x8f3   : > { %v3964_v24 = vpop.eup %3963  ;;  %3804 = vmatprep.subr.bf16.mxu0 %v4107_v1 }
 0x8f4   : > { %v2543_v5 = vsel %vm1125_vm2, %v3964_v24, 0.0 }
 0x8f5   : > { %2544 = vadd.xlane.f32.xlu1 %v2543_v5 }
 0x8f7   : > { %v3966_v7 = vpop.eup %3965 }
 0x8f8   : > { %v2546_v8 = vsel %vm1125_vm2, %v3966_v7, 0.0 }
 0x8f9   : > { %2547 = vadd.xlane.f32.xlu0 %v2546_v8 }
 0x8fb   : > { %v3968_v9 = vpop.eup %3967 }
 0x8fc   : > { %v3970_v10 = vpop.eup %3969  ;;  %v2552_v11 = vsel %vm1125_vm2, %v3968_v9, 0.0 }
 0x8fd   : > { %2553 = vadd.xlane.f32.xlu0 %v2552_v11  ;;  %v2549_v12 = vsel %vm1125_vm2, %v3970_v10, 0.0 }
 0x8fe   : > { %2550 = vadd.xlane.f32.xlu1 %v2549_v12 }
 0x90f   : > { %2666 = vrot.lane.b32.xlu1 %v4642_v3, %s5019_s0 }
 0x913   : > { %2715 = vrot.lane.b32.xlu1 %v4644_v4, %s5019_s0  ;;  %2617 = vrot.lane.b32.xlu0 %v4622_v38, %s5019_s0  ;;  %s4808_s0 = scalar_lea.hbm %s4958_s25, %s3506_s29 }
 0x982   : > { %v2545_v13 = vpop.xlane.xlu1 %2544 }
 0x983   : > { %3971 = vrcp.f32 %v2545_v13 }
 0x986   : > { %v2548_v14 = vpop.xlane.xlu0 %2547 }
 0x987   : > { %3973 = vrcp.f32 %v2548_v14 }
 0x98a   : > { %v2554_v15 = vpop.xlane.xlu0 %2553 }
 0x98b   : > { %3975 = vrcp.f32 %v2554_v15  ;;  %v2551_v16 = vpop.xlane.xlu1 %2550 }
 0x98c   : > { %3977 = vrcp.f32 %v2551_v16  ;;  %v3481_v16 = vld [vmem:[%s4946_s13] ss:$0 sm:$0xff] }
 0x98d   : > { %v3972_v17 = vpop.eup %3971 }
 0x98e   : > { %v2556_v18 = vmul.f32 %v3972_v17, %v3964_v24  ;;  %v2618_v19 = vpop.permute.xlu0 %2617 }
 0x98f   : > { %v2623_v3 = vsel %vm1380_vm3, %v2618_v19, 0  ;;  %v2667_v20 = vpop.permute.xlu1 %2666 }
 0x990   : > { %3183 = vst.msk [vmem:[%s4695_s6] sm:$0xff] %vm1125_vm2, %v2556_v18  ;;  %3799 = vmatpush3.bf16.msra.mxu1 %v2623_v3  ;;  %v2563_v38 = vpack.c.bf16 %v2556_v18, %v2556_v18  ;;  %v2672_v23 = vsel %vm1380_vm3, %v2667_v20, 0 }
 0x991   : > { %v3974_v4 = vpop.eup %3973  ;;  %3810 = vmatprep.subr.bf16.mxu1 %v4107_v1 }
 0x992   : > { %v2558_v22 = vmul.f32 %v3974_v4, %v3966_v7  ;;  %3795 = vmatmul.mubr.msk.bf16.vlgmr.msra.gmra.mrb[56].mxu0 %vm1125_vm2, %v2563_v38 }
 0x993   : > { %3805 = vmatpush3.bf16.msra.mxu0 %v2672_v23  ;;  %v2716_v25 = vpop.permute.xlu1 %2715  ;;  %3806 = vmatprep.mubr.msk.bf16.mxu0 %vm4108_vm0, %v4107_v1 }
 0x994   : > { %3184 = vst.msk [vmem:[%s4695_s6 + $0x8] sm:$0xff] %vm1125_vm2, %v2558_v22  ;;  %v2564_v26 = vpack.c.bf16 %v2558_v22, %v2558_v22  ;;  %3816 = vmatprep.subr.bf16.mxu0 %v4107_v1  ;;  %v2721_v29 = vsel %vm1380_vm3, %v2716_v25, 0 }
 0x995   : > { %v3976_v27 = vpop.eup %3975 }
 0x996   : > { %v3978_v28 = vpop.eup %3977  ;;  %v2562_v21 = vmul.f32 %v3976_v27, %v3968_v9  ;;  %3801 = vmatmul.mubr.msk.bf16.vlgmr.msra.gmra.mrb[56].mxu1 %vm1125_vm2, %v2564_v26 }
 0x997   : > { %v2560_v30 = vmul.f32 %v3978_v28, %v3970_v10  ;;  %3811 = vmatpush3.bf16.msra.mxu1 %v2721_v29  ;;  %3812 = vmatprep.mubr.msk.bf16.mxu1 %vm4108_vm0, %v4107_v1  ;;  %v3939_v28 = vld [vmem:[%s4947_s14] sm:$0xff]   ;;  %v3942_v29 = vld [vmem:[%s4949_s16 + $0x8] sm:$0xff]  }
 0x998   : > { %3186 = vst.msk [vmem:[%s4695_s6 + $0x18] sm:$0xff] %vm1125_vm2, %v2562_v21  ;;  %3822 = vmatprep.subr.bf16.mxu1 %v4107_v1  ;;  %v2566_v32 = vpack.c.bf16 %v2562_v21, %v2562_v21  ;;  %v3940_v21 = vld [vmem:[%s4947_s14 + $0x8] sm:$0xff]  }
 0x999   : > { %3185 = vst.msk [vmem:[%s4695_s6 + $0x10] sm:$0xff] %vm1125_vm2, %v2560_v30  ;;  %v2565_v31 = vpack.c.bf16 %v2560_v30, %v2560_v30 }
 0x99b   : > { %3807 = vmatmul.mubr.msk.bf16.vlgmr.msra.gmra.mrb[60].mxu0 %vm1125_vm2, %v2565_v31 }
 0x99c   : > { %3818 = vmatprep.mubr.msk.bf16.mxu0 %vm4108_vm0, %v4107_v1  ;;  %3817 = vmatpush3.bf16.msra.mxu0 %v2775_v34  ;;  %v3482_v34 = vld [vmem:[%s4953_s20] ss:$0 sm:$0xff] }
 0x99d   : > { %3828 = vmatprep.subr.bf16.mxu0 %v4107_v1 }
 0x99e   : > { %3813 = vmatmul.mubr.msk.bf16.vlgmr.msra.gmra.mrb[60].mxu1 %vm1125_vm2, %v2566_v32 }
 0x99f   : > { %3824 = vmatprep.mubr.msk.bf16.mxu1 %vm4108_vm0, %v4107_v1  ;;  %3823 = vmatpush3.bf16.msra.mxu1 %v2821_v37  ;;  %v3483_v37 = vld [vmem:[%s4954_s21] ss:$0 sm:$0xff] }
 0x9a0   : > { %3834 = vmatprep.subr.bf16.mxu1 %v4107_v1 }
 0xa65   : > { %v2610_v40 = vpop.f32.mrb[56].mxu0 }
 0xa66   : > { %v2763_v41 = vpack.c.bf16 %v2610_v40, %v2610_v40  ;;  %v3796_v42 = vpop.f32.mrb[57].mxu0 }
 0xa67   : > { %v2613_v44 = vpop.f32.mrb[58].mxu0  ;;  %v3943_v42 = vld [vmem:[%s4949_s16 + $0x10] sm:$0xff]  }
 0xa68   : > { %v3797_v45 = vpop.f32.mrb[59].mxu0  ;;  %3819 = vmatmul.mubr.msk.bf16.vlgmr.msra.gmra.mrb[64].mxu0 %vm1125_vm2, %v2763_v41  ;;  %v3484_v44 = vld [vmem:[%s4948_s15] ss:$0 sm:$0xff] }
 0xa69   : > { %v2659_v46 = vpop.f32.mrb[56].mxu1  ;;  %3829 = vmatpush3.bf16.msra.mxu0 %v2867_v43  ;;  %3830 = vmatprep.mubr.msk.bf16.mxu0 %vm4108_vm0, %v4107_v1  ;;  %v3944_v43 = vld [vmem:[%s4949_s16 + $0x18] sm:$0xff]  }
 0xa6a   : > { %v2764_v47 = vpack.c.bf16 %v2659_v46, %v2659_v46  ;;  %v3802_v48 = vpop.f32.mrb[57].mxu1  ;;  %3840 = vmatprep.subr.bf16.mxu0 %v4107_v1 }
 0xa6b   : > { %v2662_v50 = vpop.f32.mrb[58].mxu1 }
 0xa6c   : > { %v3803_v51 = vpop.f32.mrb[59].mxu1  ;;  %3825 = vmatmul.mubr.msk.bf16.vlgmr.msra.gmra.mrb[64].mxu1 %vm1125_vm2, %v2764_v47 }
 0xa6d   : > { %3835 = vmatpush3.bf16.msra.mxu1 %v2913_v49  ;;  %3836 = vmatprep.mubr.msk.bf16.mxu1 %vm4108_vm0, %v4107_v1 }
 0xa6e   : > { %v2708_v52 = vpop.f32.mrb[60].mxu0  ;;  %3848 = vmatprep.subr.bf16.mxu1 %v4107_v1 }
 0xa6f   : > { %v2765_v53 = vpack.c.bf16 %v2708_v52, %v2708_v52  ;;  %v3808_v54 = vpop.f32.mrb[61].mxu0 }
 0xa70   : > { %v2711_v6 = vpop.f32.mrb[62].mxu0 }
 0xa71   : > { %v3809_v55 = vpop.f32.mrb[63].mxu0  ;;  %3831 = vmatmul.mubr.msk.bf16.vlgmr.msra.gmra.mrb[68].mxu0 %vm1125_vm2, %v2765_v53  ;;  %v2757_v56 = vpop.f32.mrb[60].mxu1 }
 0xa72   : > { %v2766_v57 = vpack.c.bf16 %v2757_v56, %v2757_v56  ;;  %v3814_v58 = vpop.f32.mrb[61].mxu1  ;;  %3844 = vmatprep.mubr.msk.bf16.mxu0 %vm4108_vm0, %v4107_v1  ;;  %3841 = vmatpush3.bf16.msra.mxu0 %v3939_v28 }
 0xa73   : > { %v2760_v59 = vpop.f32.mrb[62].mxu1  ;;  %3842 = vmatprep.subr.bf16.mxu0 %v4107_v1 }
 0xa74   : > { %v3815_v60 = vpop.f32.mrb[63].mxu1  ;;  %3837 = vmatmul.mubr.msk.bf16.vlgmr.msra.gmra.mrb[68].mxu1 %vm1125_vm2, %v2766_v57 }
 0xa75   : > { %3856 = vmatprep.mubr.msk.bf16.mxu1 %vm4108_vm0, %v4107_v1 }
 0xa76   : > { %3843 = vmatpush3.bf16.msra.mxu0 %v3940_v21 }
 0xb3b   : > { %v2811_v61 = vpop.f32.mrb[64].mxu0 }
 0xb3c   : > { %v3820_v62 = vpop.f32.mrb[65].mxu0 }
 0xb3d   : > { %v2814_v63 = vpop.f32.mrb[66].mxu0 }
 0xb3e   : > { %v3821_v2 = vpop.f32.mrb[67].mxu0 }
 0xb3f   : > { %v2857_v24 = vpop.f32.mrb[64].mxu1 }
 0xb40   : > { %v2955_v5 = vadd.f32 %v2857_v24, %v2811_v61  ;;  %v3826_v7 = vpop.f32.mrb[65].mxu1 }
 0xb41   : > { %v2860_v8 = vpop.f32.mrb[66].mxu1 }
 0xb42   : > { %v3827_v9 = vpop.f32.mrb[67].mxu1 }
 0xb44   : > { %v2903_v10 = vpop.f32.mrb[68].mxu0 }
 0xb45   : > { %v2956_v11 = vadd.f32 %v2955_v5, %v2903_v10  ;;  %v3832_v12 = vpop.f32.mrb[69].mxu0 }
 0xb46   : > { %v2906_v13 = vpop.f32.mrb[70].mxu0 }
 0xb47   : > { %v3833_v14 = vpop.f32.mrb[71].mxu0  ;;  %v2949_v15 = vpop.f32.mrb[68].mxu1 }
 0xb48   : > { %v2957_v17 = vadd.f32 %v2956_v11, %v2949_v15  ;;  %v3838_v18 = vpop.f32.mrb[69].mxu1 }
 0xb49   : > { %v2952_v19 = vpop.f32.mrb[70].mxu1 }
 0xb4a   : > { %v2965_v3 = vadd.f32 %v3481_v16, %v2957_v17  ;;  %v3839_v20 = vpop.f32.mrb[71].mxu1 }
 0xb4c   : > { %v2966_v38 = vadd.f32 %v2965_v3, %v4534_v0  ;;  %v3941_v0 = vld [vmem:[%s4949_s16] sm:$0xff]  }
 0xb4d   : > { %3849 = vmatpush3.bf16.msra.mxu1 %v3941_v0 }
 0xb4e   : > { %v2969_v4 = vsel %vm918_vm1, %v2966_v38, 0.0  ;;  %3850 = vmatprep.subr.bf16.mxu1 %v4107_v1 }
 0xb4f   : > { %2970 = vadd.xlane.f32.xlu0 %v2969_v4 }
 0xb51   : > { %3851 = vmatpush3.bf16.msra.mxu1 %v3942_v29 }
 0xb52   : > { %3852 = vmatprep.subr.bf16.mxu1 %v4107_v1 }
 0xb55   : > { %3853 = vmatpush3.bf16.msra.mxu1 %v3943_v42 }
 0xb56   : > { %3854 = vmatprep.subr.bf16.mxu1 %v4107_v1  ;;  %v3488_v1 = vld [vmem:[%s4950_s17] ss:$0 sm:$0xff] }
 0xb59   : > { %3855 = vmatpush3.bf16.msra.mxu1 %v3944_v43 }
 0xbdc   : > { %v2971_v22 = vpop.xlane.xlu0 %2970 }
 0xbdd   : > { %v2972_v23 = vmul.f32 0.03125, %v2971_v22 }
 0xbdf   : > { %v2973_v25 = vsub.f32 %v2966_v38, %v2972_v23 }
 0xbe1   : > { %v2974_v26 = vmul.f32 %v2973_v25, %v2973_v25 }
 0xbe3   : > { %v2975_v27 = vsel %vm918_vm1, %v2974_v26, 0.0 }
 0xbe4   : > { %2976 = vadd.xlane.f32.xlu1 %v2975_v27 }
 0xc71   : > { %v2977_v30 = vpop.xlane.xlu1 %2976 }
 0xc72   : > { %v2978_v31 = vmul.f32 0.03125, %v2977_v30 }
 0xc74   : > { %v2979_v32 = vadd.f32 1e-06, %v2978_v31 }
 0xc76   : > { %3979 = vrsqrt.f32 %v2979_v32 }
 0xc80   : > { %v3980_v33 = vpop.eup %3979 }
 0xc81   : > { %v2981_v36 = vmul.f32 %v3980_v33, %v2973_v25 }
 0xc83   : > { %v2988_v39 = vmul.f32 %v3482_v34, %v2981_v36 }
 0xc85   : > { %v2995_v40 = vadd.f32 %v3483_v37, %v2988_v39 }
 0xc87   : > { %v2996_v41 = vpack.c.bf16 %v2995_v40, %v2995_v40 }
 0xc89   : > { %3845 = vmatmul.mubr.msk.bf16.vlgmr.msra.gmra.mrb[72].mxu0 %vm918_vm1, %v2996_v41 }
 0xd5c   : > { %v3057_v35 = vpop.f32.mrb[72].mxu0 }
 0xd5d   : > { %v3058_v45 = vadd.f32 %v3484_v44, %v3057_v35  ;;  %v3846_v46 = vpop.f32.mrb[73].mxu0 }
 0xd5e   : > { %v3060_v47 = vpop.f32.mrb[74].mxu0 }
 0xd5f   : > { %v3063_v48 = vmax.f32 %v3058_v45, 0.0  ;;  %v3847_v49 = vpop.f32.mrb[75].mxu0 }
 0xd61   : > { %v3064_v50 = vpack.c.bf16 %v3063_v48, %v3063_v48 }
 0xd63   : > { %3857 = vmatmul.mubr.msk.bf16.vlgmr.msra.gmra.mrb[72].mxu1 %vm3104_vm4, %v3064_v50 }
 0xe36   : > { %v3142_v51 = vpop.f32.mrb[72].mxu1 }
 0xe37   : > { %v3143_v52 = vadd.f32 %v3488_v1, %v3142_v51  ;;  %v3858_v53 = vpop.f32.mrb[73].mxu1 }
 0xe38   : > { %v3145_v54 = vpop.f32.mrb[74].mxu1 }
 0xe39   : > { %v3859_v6 = vpop.f32.mrb[75].mxu1  ;;  %v3148_v55 = vadd.f32 %v3143_v52, %v2995_v40 }
 0xe3b   : > { %v3151_v56 = vsel %vm918_vm1, %v3148_v55, 0.0 }
 0xe3c   : > { %3152 = vadd.xlane.f32.xlu0 %v3151_v56 }
 0xec9   : > { %v3153_v57 = vpop.xlane.xlu0 %3152 }
 0xeca   : > { %v3154_v58 = vmul.f32 0.03125, %v3153_v57 }
 0xecc   : > { %v4796_v59 = vsub.f32 %v3148_v55, %v3154_v58 }
 0xece   : > { %v3156_v60 = vmul.f32 %v4796_v59, %v4796_v59 }
 0xed0   : > { %v3157_v61 = vsel %vm918_vm1, %v3156_v60, 0.0 }
 0xed1   : > { %3158 = vadd.xlane.f32.xlu0 %v3157_v61 }
 0xed2   : > { %3996 = shalt.err (!%p3993_p3)
}
 0xed3   : > { %s3997_s28 = scalar_lea.hbm %s4808_s0, 512  ;;  %s4001_s7 = scalar_lea.hbm %s4958_s25, 1024 }
 0xed4   : > { %p3998_p4 = scmp.ne.s32.totalorder %s4808_s0, %s3997_s28  ;;  %p4002_p9 = scmp.lt.u32.totalorder %s4808_s0, %s4958_s25 }
 0xed5   : > { %p4003_p10 = scmp.lt.u32.totalorder %s4001_s7, %s3997_s28  ;;  %p4005_p12 = scmp.lt.u32.totalorder %s3997_s28, %s4808_s0 }
 0xed6   : > { %p3999_p7 = pnand %p3998_p4, %p4291_p5 }
 0xed7   : > { %p4004_p11 = por %p4003_p10, %p4002_p9 }
 0xed8   : > { %p4000_p8 = pneg %p3999_p7 }
 0xed9   : > { %p4006_p13 = por %p4005_p12, %p4004_p11 }
 0xedb   : > { %p4007_p0 = pnand %p4006_p13, %p4000_p8 }
 0xedd   : > { %4010 = shalt.err (!%p4007_p0)
}
 0xede   : > { %s4112_s11 = smov 128   ;;  %s4113_s5 = smov 8  }
 0xedf   : > { %3861 = dma.vmem_to_hbm [thread:$0]  (%p4291_p5), %s4811_s3, 512, %s4808_s0, %s4813_s30, %s4112_s11, %s4112_s11, %s4113_s5  }
 0xee0   : > { %s4845_s4 = scalar_lea.hbm %s4959_s26, %s3506_s29  ;;  %s3240_s7 = sshll.u32 %s4695_s6, 4  ;;  %s4848_s7 = int_to_ptr.vmem [resolvable:$true] %s3240_s7 }
 0xee1   : > { %s4011_s27 = scalar_lea.vmem %s4848_s7, 512  ;;  %s4114_s1 = smov [#allocation6]  }
 0xee2   : > { %p4012_p1 = scmp.ne.s32.totalorder %s4848_s7, %s4011_s27  ;;  %s4015_s12 = sshll.u32 %s4114_s1, 4  ;;  %s4016_s12 = int_to_ptr.vmem [resolvable:$false] %s4015_s12 }
 0xee3   : > { %s4017_s0 = scalar_lea.vmem %s4016_s12, 1024  ;;  %p4018_p4 = scmp.lt.s32.totalorder %s4848_s7, %s4016_s12 }
 0xee4   : > { %p4013_p2 = pnand %p4012_p1, %p4291_p5  ;;  %p4019_p7 = scmp.lt.s32.totalorder %s4017_s0, %s4011_s27 }
 0xee6   : > { %p4014_p3 = pneg %p4013_p2  ;;  %p4020_p8 = por %p4019_p7, %p4018_p4 }
 0xee8   : > { %p4021_p9 = pnand %p4020_p8, %p4014_p3 }
 0xeea   : > { %4024 = shalt.err (!%p4021_p9)
}
 0xeeb   : > { %s4025_s6 = scalar_lea.hbm %s4845_s4, 512  ;;  %s4029_s10 = scalar_lea.hbm %s4959_s26, 1024 }
 0xeec   : > { %p4026_p10 = scmp.ne.s32.totalorder %s4845_s4, %s4025_s6  ;;  %p4030_p13 = scmp.lt.u32.totalorder %s4845_s4, %s4959_s26 }
 0xeed   : > { %p4031_p0 = scmp.lt.u32.totalorder %s4029_s10, %s4025_s6  ;;  %p4033_p2 = scmp.lt.u32.totalorder %s4025_s6, %s4845_s4 }
 0xeee   : > { %p4027_p11 = pnand %p4026_p10, %p4291_p5 }
 0xeef   : > { %p4032_p1 = por %p4031_p0, %p4030_p13 }
 0xef0   : > { %p4028_p12 = pneg %p4027_p11 }
 0xef1   : > { %p4034_p3 = por %p4033_p2, %p4032_p1 }
 0xef3   : > { %p4035_p4 = pnand %p4034_p3, %p4028_p12 }
 0xef5   : > { %4038 = shalt.err (!%p4035_p4)
}
 0xef6   : > { %3862 = dma.vmem_to_hbm [thread:$0]  (%p4291_p5), %s4848_s7, 512, %s4845_s4, %s4813_s30, %s4112_s11, %s4112_s11, %s4113_s5  }
 0xef7   : > { %s3400_s27 = sshll.u32 %s4441_s9, 3  ;;  %v3494_v5 = vld [vmem:[%s4955_s22] ss:$0 sm:$0xff]  ;;  %s3499_s3 = sshll.u32 %s4272_s8, 7 }
 0xef8   : > { %v3495_v8 = vld [vmem:[%s4956_s23] ss:$0 sm:$0xff]  ;;  %s823_s30 = scalar_lea.vmem [#allocation2], %s3400_s27  ;;  %s4887_s7 = scalar_lea.hbm %s4957_s24, %s3499_s3 }
 0xef9   : > { %s3211_s11 = sshll.u32 %s823_s30, 4  ;;  %s3188_s10 = scalar_lea.sflag [#allocation3], %s4441_s9  ;;  %s4889_s11 = int_to_ptr.vmem [resolvable:$true] %s3211_s11 }
 0xefa   : > { %s4039_s28 = scalar_lea.vmem %s4889_s11, 128  ;;  %s4115_s8 = smov [#allocation2]  }
 0xefb   : > { %p4040_p7 = scmp.ne.s32.totalorder %s4889_s11, %s4039_s28  ;;  %s4043_s12 = sshll.u32 %s4115_s8, 4  ;;  %s4044_s12 = int_to_ptr.vmem [resolvable:$false] %s4043_s12 }
 0xefc   : > { %s4045_s27 = scalar_lea.vmem %s4044_s12, 256  ;;  %p4046_p10 = scmp.lt.s32.totalorder %s4889_s11, %s4044_s12 }
 0xefd   : > { %p4041_p8 = pnand %p4040_p7, %p4291_p5  ;;  %p4047_p11 = scmp.lt.s32.totalorder %s4045_s27, %s4039_s28 }
 0xeff   : > { %p4042_p9 = pneg %p4041_p8  ;;  %p4048_p12 = por %p4047_p11, %p4046_p10 }
 0xf01   : > { %p4049_p13 = pnand %p4048_p12, %p4042_p9 }
 0xf5e   : > { %v3159_v62 = vpop.xlane.xlu0 %3158 }
 0xf5f   : > { %v3160_v63 = vmul.f32 0.03125, %v3159_v62 }
 0xf61   : > { %v3161_v2 = vadd.f32 1e-06, %v3160_v63 }
 0xf63   : > { %3981 = vrsqrt.f32 %v3161_v2 }
 0xf6d   : > { %v3982_v24 = vpop.eup %3981 }
 0xf6e   : > { %v3163_v7 = vmul.f32 %v3982_v24, %v4796_v59 }
 0xf70   : > { %v3170_v9 = vmul.f32 %v3494_v5, %v3163_v7 }
 0xf72   : > { %v3177_v10 = vadd.f32 %v3495_v8, %v3170_v9 }
 0xf74   : > { %3178 = vst.msk [vmem:[%s823_s30] sm:$0xff] %vm918_vm1, %v3177_v10 }
 0xf75   : > { %4052 = shalt.err (!%p4049_p13)
}
 0xf76   : > { %s4053_s9 = scalar_lea.hbm %s4887_s7, 128  ;;  %s4057_s6 = scalar_lea.hbm %s4957_s24, 256 }
 0xf77   : > { %p4054_p0 = scmp.ne.s32.totalorder %s4887_s7, %s4053_s9  ;;  %p4058_p3 = scmp.lt.u32.totalorder %s4887_s7, %s4957_s24 }
 0xf78   : > { %p4059_p4 = scmp.lt.u32.totalorder %s4057_s6, %s4053_s9  ;;  %p4061_p8 = scmp.lt.u32.totalorder %s4053_s9, %s4887_s7 }
 0xf79   : > { %p4055_p1 = pnand %p4054_p0, %p4291_p5 }
 0xf7a   : > { %p4060_p7 = por %p4059_p4, %p4058_p3 }
 0xf7b   : > { %p4056_p2 = pneg %p4055_p1 }
 0xf7c   : > { %p4062_p9 = por %p4061_p8, %p4060_p7 }
 0xf7e   : > { %p4063_p10 = pnand %p4062_p9, %p4056_p2 }
 0xf80   : > { %4066 = shalt.err (!%p4063_p10)
}
 0xf81   : > { %3860 = dma.vmem_to_hbm [thread:$0]  (%p4291_p5), %s4889_s11, 128, %s4887_s7, %s3188_s10  }
 0xf82 PF: > { %s5022_s30 = sld [smem:[#allocation12_spill]]  ;;  %s5023_s5 = sld [smem:[#allocation9_spill]] }
 0xf88   : > { %p3876_p11 = scmp.ge.s32.totalorder %s5022_s30, 2  ;;  %s3255_s28 = sand.u32 1, %s5023_s5  }
 0xf89   : > { %s3256_s8 = scalar_lea.sflag [#allocation3], %s3255_s28 }
 0xf8a   : > { %p3867_p12 = pnand %p3876_p11, %p4295_p6 }
 0xf8c   : > { %4084 = dma.done.wait (!%p3867_p12), %s3256_s8, 128  }
 0xf8d   : > { %4086 = vsyncadd (!%p3867_p12), %s3256_s8, 4294967168  ;;  %s5025_s12 = sadd.s32 4294967294, %s5022_s30  }
 0xf8e   : > { %s3264_s27 = sand.u32 1, %s5025_s12  }
 0xf8f   : > { %s3265_s9 = scalar_lea.sflag [#allocation5], %s3264_s27 }
 0xf90   : > { %4088 = dma.done.wait (!%p3867_p12), %s3265_s9, 1024  }
 0xf91   : > { %4090 = vsyncadd (!%p3867_p12), %s3265_s9, 4294966272  ;;  %s5026_s28 = sld [smem:[#allocation13_spill]]  ;;  %s5027_s27 = sld [smem:[#allocation10_spill]] }
 0xf92   : > { %s5028_s3 = sld [smem:[#allocation11_spill]]  ;;  %s5029_s7 = sld [smem:[#allocation14_spill]] }
 0xf97   : > { %p40_p5 = scmp.ge.s32.totalorder %s5026_s28, 4  }
 0xf99   :  { %42 = sbr.rel (!%p40_p5) target bundleno = 19 (0x13), region = 192 }
 0xfa0   :  { %3279 = vsyncpa [#allocation3], 1 }
 0xfa1   :  { %3281 = vsyncpa [#allocation3 + $0x1], 1 }
 0xfa2   :  { %3282 = vsyncpa [#allocation5], 1 }
 0xfa3   :  { %3284 = vsyncpa [#allocation5 + $0x1], 1 }

</bundles_post_ra>
